<compile_context>
chip_gen: v5e
topology: v5e:2x2
jax: 0.10.0
libtpu: 0.0.40
codegen_flags: <defaults>
</compile_context>

<pallas_src>
import functools

import jax
import jax.numpy as jnp
from jax import lax
from jax.experimental import pallas as pl
from jax.experimental.pallas import tpu as pltpu


def _round_up(x, m):
    return ((x + m - 1) // m) * m


# ------------------------------------------------------------------ kernel ---

def _one_conv_kernel(c_in, c_out, h, w_out, wp,
                     x_ref, w_ref, b_ref, alpha_ref, o_ref, xpad_ref):
    """One batch-element step: conv3x3(+bias) + PReLU + channel-concat.

    x_ref    : (1, h, w_out, c_in)  f32   input image (NHWC block)
    w_ref    : (3, c_in, 3*c_out)   bf16  per-kh weight slabs [kw0|kw1|kw2]
    b_ref    : (1, c_out)           f32   conv bias
    alpha_ref: SMEM (1,)            f32   shared PReLU slope
    o_ref    : (1, h, w_out, c_in+c_out)  fused [x | prelu(conv(x))] tile
    xpad_ref : VMEM (h+2, wp, c_in) bf16  zero-padded working window (scratch)
    """
    # --- build the padded bf16 window in scratch (all stores sublane-aligned;
    #     padding regions re-zeroed every step so the kernel is order/core safe).
    row_zeros = jnp.zeros((1, wp, c_in), jnp.bfloat16)
    xpad_ref[0:1, :, :] = row_zeros                                   # top halo row
    xpad_ref[h + 1:h + 2, :, :] = row_zeros                           # bottom halo row
    xpad_ref[1:1 + h, w_out:wp, :] = jnp.zeros((h, wp - w_out, c_in), jnp.bfloat16)
    xpad_ref[1:1 + h, 0:w_out, :] = x_ref[0].astype(jnp.bfloat16)     # interior

    # --- 3 wide MXU matmuls (one per kh), kw folded into the N dimension.
    m = h * wp
    acc = jnp.zeros((m, 3 * c_out), jnp.float32)
    for kh in range(3):
        lhs = xpad_ref[kh:kh + h, :, :].reshape(m, c_in)              # free view: aligned
        acc = acc + jnp.dot(lhs, w_ref[kh], preferred_element_type=jnp.float32)
    r = acc.reshape(h, wp, 3 * c_out)

    # --- combine the 3 kw column blocks with shifted adds.
    # out[:, w] = r[:, w-1, kw0] + r[:, w, kw1] + r[:, w+1, kw2]
    # (x lives at scratch cols [0, w_out); cols >= w_out are zero, so the
    #  left-boundary term is obtained by prepending one zero column.)
    zero_col = jnp.zeros((h, 1, c_out), jnp.float32)
    a0 = jnp.concatenate([zero_col, r[:, 0:w_out - 1, 0:c_out]], axis=1)
    a1 = r[:, 0:w_out, c_out:2 * c_out]
    a2 = r[:, 1:1 + w_out, 2 * c_out:3 * c_out]

    y = a0 + a1 + a2 + b_ref[...]                  # conv bias (f32 epilogue)
    alpha = alpha_ref[0]
    y = jnp.where(y > 0.0, y, alpha * y)           # PReLU (single shared alpha)

    # --- fused torch.cat((x, y), dim=channel): one lane-dense 128-wide store.
    # Pass-through comes from the f32 input ref -> bit-exact concat of x.
    out = jnp.concatenate([x_ref[0], y.astype(o_ref.dtype)], axis=-1)
    o_ref[0] = out


# ----------------------------------------------------------------- wrapper ---

def one_conv_forward_nhwc(params, x_nhwc):
    """NHWC -> NHWC fused forward (preferred entry point inside a model)."""
    w = params["w"]                      # (G, G0, 3, 3)  torch OIHW layout
    b = params["b"]                      # (G,)
    alpha = params["alpha"]              # scalar PReLU slope (nn.PReLU() default)
    c_out, c_in = int(w.shape[0]), int(w.shape[1])
    n, h, wd, c = x_nhwc.shape
    assert c == c_in, (c, c_in)

    # Working width rounded to 8 sublanes -> aligned scratch rows / free reshapes.
    wp = _round_up(wd + 2, 8)

    # TODO(synk): for large SR resolutions where a whole (H+2, WP, C) image slab
    # does not fit the per-generation VMEM budget (32 MiB scoped on v7x), add a
    # row-block grid axis with a 2-row halo using the same scratch scheme.

    # Per-kh weight slabs, kw side by side in N:  slab[kh][ci, kw*c_out + co].
    w_slab = (jnp.transpose(w, (2, 1, 3, 0))         # (kh, ci, kw, co)
              .reshape(3, c_in, 3 * c_out)
              .astype(jnp.bfloat16))                 # bf16 MXU operands
    b_row = b.reshape(1, c_out).astype(jnp.float32)
    alpha_arr = jnp.reshape(alpha, (1,)).astype(jnp.float32)

    kernel = functools.partial(_one_conv_kernel, c_in, c_out, h, wd, wp)

    out_nhwc = pl.pallas_call(
        kernel,
        grid=(n,),
        in_specs=[
            # one whole image per grid step (no halo BlockSpec, no host pad)
            pl.BlockSpec((1, h, wd, c_in), lambda i: (i, 0, 0, 0)),
            # weights / bias: constant index maps -> VMEM-resident across steps
            pl.BlockSpec((3, c_in, 3 * c_out), lambda i: (0, 0, 0)),
            pl.BlockSpec((1, c_out), lambda i: (0, 0)),
            # PReLU alpha as an SMEM scalar
            pl.BlockSpec(memory_space=pltpu.MemorySpace.SMEM),
        ],
        out_specs=pl.BlockSpec((1, h, wd, c_in + c_out), lambda i: (i, 0, 0, 0)),
        out_shape=jax.ShapeDtypeStruct((n, h, wd, c_in + c_out), x_nhwc.dtype),
        scratch_shapes=[pltpu.VMEM((h + 2, wp, c_in), jnp.bfloat16)],
        compiler_params=pltpu.CompilerParams(
            dimension_semantics=("parallel",)),
    )(x_nhwc, w_slab, b_row, alpha_arr)

    return out_nhwc


def one_conv_forward(params, x_nchw):
    """NCHW -> NCHW forward matching torch one_conv(G0, G) (inference).

    The boundary transposes exist only to match the PyTorch layout; a full model
    should stay NHWC end-to-end and call one_conv_forward_nhwc directly.
    """
    x = jnp.transpose(x_nchw, (0, 2, 3, 1)).astype(jnp.float32)       # NHWC
    out_nhwc = one_conv_forward_nhwc(params, x)
    return jnp.transpose(out_nhwc, (0, 3, 1, 2))


# ------------------------------------------------------ plain-JAX reference ---

def one_conv_reference(params, x_nchw):
    w, b, alpha = params["w"], params["b"], params["alpha"]
    y = lax.conv_general_dilated(
        x_nchw, w, window_strides=(1, 1), padding=((1, 1), (1, 1)),
        dimension_numbers=("NCHW", "OIHW", "NCHW"),
        precision=lax.Precision.HIGHEST)
    y = y + b.reshape(1, -1, 1, 1)
    y = jnp.where(y > 0.0, y, alpha * y)
    return jnp.concatenate([x_nchw, y], axis=1)


# -------------------------------------------------------------------- main ---

if __name__ == "__main__":
    key = jax.random.PRNGKey(0)
    kx, kwt, kb = jax.random.split(key, 3)

    # one_conv(G0=96, G=32): the RDB growth step (G0 = 64 + 1*32) in SSRDEFNet.
    n, g0, g, h, w = 2, 96, 32, 16, 16

    def bf16_grid(a):
        # Keep test data exactly bf16-representable so the bf16 MXU operand cast
        # inside the kernel is lossless and the check is precision-insensitive.
        return a.astype(jnp.bfloat16).astype(jnp.float32)

    x = bf16_grid(jax.random.normal(kx, (n, g0, h, w), jnp.float32))
    params = {
        "w": bf16_grid(0.05 * jax.random.normal(kwt, (g, g0, 3, 3), jnp.float32)),
        "b": bf16_grid(0.1 * jax.random.normal(kb, (g,), jnp.float32)),
        # nn.PReLU() default: one shared parameter. (A per-channel PReLU would
        # need a (1, G) VMEM row broadcast over lanes instead of an SMEM scalar.)
        "alpha": jnp.float32(0.25),
    }

    out = jax.block_until_ready(one_conv_forward(params, x))
    assert out.shape == (n, g0 + g, h, w), out.shape

    ref = jax.block_until_ready(one_conv_reference(params, x))
    err = float(jnp.max(jnp.abs(out - ref)))
    assert err < 2e-3, f"mismatch vs reference: {err}"

    print("KERNEL_OK")
</pallas_src>

<mosaic_0001>
module attributes {stable_mosaic.version = 11 : i64} {
  func.func @_one_conv_kernel(%arg0: i32, %arg1: memref<1x16x16x96xf32, #tpu.memory_space<vmem>>, %arg2: memref<3x96x96xbf16, #tpu.memory_space<vmem>>, %arg3: memref<1x32xf32, #tpu.memory_space<vmem>>, %arg4: memref<1xf32, #tpu.memory_space<smem>>, %arg5: memref<1x16x16x128xf32, #tpu.memory_space<vmem>>, %arg6: memref<18x24x96xbf16, #tpu.memory_space<vmem>>) attributes {dimension_semantics = [#tpu.dimension_semantics<parallel>], iteration_bounds = array<i64: 2>, scalar_prefetch = 0 : i64, scratch_operands = 1 : i64, tpu.core_type = #tpu.core_type<tc>, window_params = [{transform_indices = @transform_0, window_bounds = array<i64: 1, 16, 16, 96>}, {pipeline_mode = #tpu.pipeline_mode<synchronous>, transform_indices = @transform_1, window_bounds = array<i64: 3, 96, 96>}, {pipeline_mode = #tpu.pipeline_mode<synchronous>, transform_indices = @transform_2, window_bounds = array<i64: 1, 32>}, {transform_indices = @transform_3, window_bounds = array<i64: 1>}, {transform_indices = @transform_4, window_bounds = array<i64: 1, 16, 16, 128>}]} {
    %cst = arith.constant 0.000000e+00 : bf16
    %0 = vector.broadcast %cst : bf16 to vector<1x24x96xbf16>
    %c0 = arith.constant 0 : index
    %c0_0 = arith.constant 0 : index
    %c0_1 = arith.constant 0 : index
    %1 = vector.load %arg6[%c0, %c0_0, %c0_1] : memref<18x24x96xbf16, #tpu.memory_space<vmem>>, vector<1x24x96xbf16>
    tpu.vector_store %arg6[%c0, %c0_0, %c0_1], %0 {strides = array<i32>} : memref<18x24x96xbf16, #tpu.memory_space<vmem>>, vector<1x24x96xbf16>,
    %c17 = arith.constant 17 : index
    %c0_2 = arith.constant 0 : index
    %c0_3 = arith.constant 0 : index
    %2 = vector.load %arg6[%c17, %c0_2, %c0_3] : memref<18x24x96xbf16, #tpu.memory_space<vmem>>, vector<1x24x96xbf16>
    tpu.vector_store %arg6[%c17, %c0_2, %c0_3], %0 {strides = array<i32>} : memref<18x24x96xbf16, #tpu.memory_space<vmem>>, vector<1x24x96xbf16>,
    %cst_4 = arith.constant 0.000000e+00 : bf16
    %3 = vector.broadcast %cst_4 : bf16 to vector<16x8x96xbf16>
    %c1 = arith.constant 1 : index
    %c16 = arith.constant 16 : index
    %c0_5 = arith.constant 0 : index
    %4 = vector.load %arg6[%c1, %c16, %c0_5] : memref<18x24x96xbf16, #tpu.memory_space<vmem>>, vector<16x8x96xbf16>
    tpu.vector_store %arg6[%c1, %c16, %c0_5], %3 {strides = array<i32>} : memref<18x24x96xbf16, #tpu.memory_space<vmem>>, vector<16x8x96xbf16>,
    %c0_6 = arith.constant 0 : index
    %c0_7 = arith.constant 0 : index
    %c0_8 = arith.constant 0 : index
    %c0_9 = arith.constant 0 : index
    %5 = vector.load %arg1[%c0_6, %c0_7, %c0_8, %c0_9] : memref<1x16x16x96xf32, #tpu.memory_space<vmem>>, vector<1x16x16x96xf32>
    %6 = vector.shape_cast %5 : vector<1x16x16x96xf32> to vector<16x16x96xf32>
    %7 = arith.truncf %6 : vector<16x16x96xf32> to vector<16x16x96xbf16>
    %c1_10 = arith.constant 1 : index
    %c0_11 = arith.constant 0 : index
    %c0_12 = arith.constant 0 : index
    %8 = vector.load %arg6[%c1_10, %c0_11, %c0_12] : memref<18x24x96xbf16, #tpu.memory_space<vmem>>, vector<16x16x96xbf16>
    tpu.vector_store %arg6[%c1_10, %c0_11, %c0_12], %7 {strides = array<i32>} : memref<18x24x96xbf16, #tpu.memory_space<vmem>>, vector<16x16x96xbf16>,
    %cst_13 = arith.constant 0.000000e+00 : f32
    %9 = vector.broadcast %cst_13 : f32 to vector<384x96xf32>
    %c0_14 = arith.constant 0 : index
    %c0_15 = arith.constant 0 : index
    %c0_16 = arith.constant 0 : index
    %10 = vector.load %arg6[%c0_14, %c0_15, %c0_16] : memref<18x24x96xbf16, #tpu.memory_space<vmem>>, vector<16x24x96xbf16>
    %11 = vector.shape_cast %10 : vector<16x24x96xbf16> to vector<384x96xbf16>
    %c0_17 = arith.constant 0 : index
    %c0_18 = arith.constant 0 : index
    %c0_19 = arith.constant 0 : index
    %12 = vector.load %arg2[%c0_17, %c0_18, %c0_19] : memref<3x96x96xbf16, #tpu.memory_space<vmem>>, vector<1x96x96xbf16>
    %13 = vector.shape_cast %12 : vector<1x96x96xbf16> to vector<96x96xbf16>
    %cst_20 = arith.constant dense<0.000000e+00> : vector<384x96xf32>
    %14 = tpu.matmul %11, %13, %cst_20 {dimension_numbers = #tpu.dot_dimension_numbers<[1], [0], [0], [1], [0, 0, 1, 1], [], []>} : vector<384x96xbf16>, vector<96x96xbf16>, vector<384x96xf32> -> vector<384x96xf32>
    %15 = arith.addf %9, %14 : vector<384x96xf32>
    %c1_21 = arith.constant 1 : index
    %c0_22 = arith.constant 0 : index
    %c0_23 = arith.constant 0 : index
    %16 = vector.load %arg6[%c1_21, %c0_22, %c0_23] : memref<18x24x96xbf16, #tpu.memory_space<vmem>>, vector<16x24x96xbf16>
    %17 = vector.shape_cast %16 : vector<16x24x96xbf16> to vector<384x96xbf16>
    %c1_24 = arith.constant 1 : index
    %c0_25 = arith.constant 0 : index
    %c0_26 = arith.constant 0 : index
    %18 = vector.load %arg2[%c1_24, %c0_25, %c0_26] : memref<3x96x96xbf16, #tpu.memory_space<vmem>>, vector<1x96x96xbf16>
    %19 = vector.shape_cast %18 : vector<1x96x96xbf16> to vector<96x96xbf16>
    %cst_27 = arith.constant dense<0.000000e+00> : vector<384x96xf32>
    %20 = tpu.matmul %17, %19, %cst_27 {dimension_numbers = #tpu.dot_dimension_numbers<[1], [0], [0], [1], [0, 0, 1, 1], [], []>} : vector<384x96xbf16>, vector<96x96xbf16>, vector<384x96xf32> -> vector<384x96xf32>
    %21 = arith.addf %15, %20 : vector<384x96xf32>
    %c2 = arith.constant 2 : index
    %c0_28 = arith.constant 0 : index
    %c0_29 = arith.constant 0 : index
    %22 = vector.load %arg6[%c2, %c0_28, %c0_29] : memref<18x24x96xbf16, #tpu.memory_space<vmem>>, vector<16x24x96xbf16>
    %23 = vector.shape_cast %22 : vector<16x24x96xbf16> to vector<384x96xbf16>
    %c2_30 = arith.constant 2 : index
    %c0_31 = arith.constant 0 : index
    %c0_32 = arith.constant 0 : index
    %24 = vector.load %arg2[%c2_30, %c0_31, %c0_32] : memref<3x96x96xbf16, #tpu.memory_space<vmem>>, vector<1x96x96xbf16>
    %25 = vector.shape_cast %24 : vector<1x96x96xbf16> to vector<96x96xbf16>
    %cst_33 = arith.constant dense<0.000000e+00> : vector<384x96xf32>
    %26 = tpu.matmul %23, %25, %cst_33 {dimension_numbers = #tpu.dot_dimension_numbers<[1], [0], [0], [1], [0, 0, 1, 1], [], []>} : vector<384x96xbf16>, vector<96x96xbf16>, vector<384x96xf32> -> vector<384x96xf32>
    %27 = arith.addf %21, %26 : vector<384x96xf32>
    %28 = vector.shape_cast %27 : vector<384x96xf32> to vector<16x24x96xf32>
    %cst_34 = arith.constant 0.000000e+00 : f32
    %29 = vector.broadcast %cst_34 : f32 to vector<16x1x32xf32>
    %30 = vector.extract_strided_slice %28 {offsets = [0, 0, 0], sizes = [16, 15, 32], strides = [1, 1, 1]} : vector<16x24x96xf32> to vector<16x15x32xf32>
    %31 = tpu.concatenate %29, %30 in 1 : vector<16x1x32xf32>, vector<16x15x32xf32> -> vector<16x16x32xf32>
    %32 = vector.extract_strided_slice %28 {offsets = [0, 0, 32], sizes = [16, 16, 32], strides = [1, 1, 1]} : vector<16x24x96xf32> to vector<16x16x32xf32>
    %33 = vector.extract_strided_slice %28 {offsets = [0, 1, 64], sizes = [16, 16, 32], strides = [1, 1, 1]} : vector<16x24x96xf32> to vector<16x16x32xf32>
    %34 = arith.addf %31, %32 : vector<16x16x32xf32>
    %35 = arith.addf %34, %33 : vector<16x16x32xf32>
    %c0_35 = arith.constant 0 : index
    %c0_36 = arith.constant 0 : index
    %36 = vector.load %arg3[%c0_35, %c0_36] : memref<1x32xf32, #tpu.memory_space<vmem>>, vector<1x32xf32>
    %37 = vector.shape_cast %36 : vector<1x32xf32> to vector<1x1x32xf32>
    %38 = vector.broadcast %37 : vector<1x1x32xf32> to vector<16x16x32xf32>
    %39 = arith.addf %35, %38 : vector<16x16x32xf32>
    %c0_37 = arith.constant 0 : index
    %40 = memref.load %arg4[%c0_37] : memref<1xf32, #tpu.memory_space<smem>>
    %cst_38 = arith.constant 0.000000e+00 : f32
    %41 = vector.broadcast %cst_38 : f32 to vector<16x16x32xf32>
    %42 = arith.cmpf ogt, %39, %41 : vector<16x16x32xf32>
    %43 = vector.broadcast %40 : f32 to vector<16x16x32xf32>
    %44 = arith.mulf %43, %39 : vector<16x16x32xf32>
    %45 = arith.select %42, %39, %44 : vector<16x16x32xi1>, vector<16x16x32xf32>
    %c0_39 = arith.constant 0 : index
    %c0_40 = arith.constant 0 : index
    %c0_41 = arith.constant 0 : index
    %c0_42 = arith.constant 0 : index
    %46 = vector.load %arg1[%c0_39, %c0_40, %c0_41, %c0_42] : memref<1x16x16x96xf32, #tpu.memory_space<vmem>>, vector<1x16x16x96xf32>
    %47 = vector.shape_cast %46 : vector<1x16x16x96xf32> to vector<16x16x96xf32>
    %48 = tpu.concatenate %47, %45 in 2 : vector<16x16x96xf32>, vector<16x16x32xf32> -> vector<16x16x128xf32>
    %c0_43 = arith.constant 0 : index
    %c0_44 = arith.constant 0 : index
    %c0_45 = arith.constant 0 : index
    %c0_46 = arith.constant 0 : index
    %49 = vector.load %arg5[%c0_43, %c0_44, %c0_45, %c0_46] : memref<1x16x16x128xf32, #tpu.memory_space<vmem>>, vector<1x16x16x128xf32>
    %50 = vector.shape_cast %49 : vector<1x16x16x128xf32> to vector<16x16x128xf32>
    %51 = vector.shape_cast %48 : vector<16x16x128xf32> to vector<1x16x16x128xf32>
    tpu.vector_store %arg5[%c0_43, %c0_44, %c0_45, %c0_46], %51 {strides = array<i32>} : memref<1x16x16x128xf32, #tpu.memory_space<vmem>>, vector<1x16x16x128xf32>,
    return
  }
  func.func @transform_0(%arg0: i32) -> (i32, i32, i32, i32) {
    %c0_i32 = arith.constant 0 : i32
    %c0_i32_0 = arith.constant 0 : i32
    %c0_i32_1 = arith.constant 0 : i32
    %c0_i32_2 = arith.constant 0 : i32
    return %arg0, %c0_i32, %c0_i32_0, %c0_i32_1 : i32, i32, i32, i32
  }
  func.func @transform_1(%arg0: i32) -> (i32, i32, i32) {
    %c0_i32 = arith.constant 0 : i32
    %c0_i32_0 = arith.constant 0 : i32
    %c0_i32_1 = arith.constant 0 : i32
    %c0_i32_2 = arith.constant 0 : i32
    return %c0_i32, %c0_i32_0, %c0_i32_1 : i32, i32, i32
  }
  func.func @transform_2(%arg0: i32) -> (i32, i32) {
    %c0_i32 = arith.constant 0 : i32
    %c0_i32_0 = arith.constant 0 : i32
    %c0_i32_1 = arith.constant 0 : i32
    return %c0_i32, %c0_i32_0 : i32, i32
  }
  func.func @transform_3(%arg0: i32) -> i32 {
    %c0_i32 = arith.constant 0 : i32
    %c0_i32_0 = arith.constant 0 : i32
    return %c0_i32 : i32
  }
  func.func @transform_4(%arg0: i32) -> (i32, i32, i32, i32) {
    %c0_i32 = arith.constant 0 : i32
    %c0_i32_0 = arith.constant 0 : i32
    %c0_i32_1 = arith.constant 0 : i32
    %c0_i32_2 = arith.constant 0 : i32
    return %arg0, %c0_i32, %c0_i32_0, %c0_i32_1 : i32, i32, i32, i32
  }
}

</mosaic_0001>

<bundles_post_ra>
// kernel: tpu_custom_call.1
= control target key start
LH: loop header
LB: loop body
LE: loop exit
PB: predicated region body
PF: predicated region fallthrough
CT: control target
= control target key end

     0   :  { %s4388_s0 = inlined_call_operand.hbm [shape: f32[2,16,16,96], index: 0, kind: input, shape index: {}]   ;;  %s4389_s1 = inlined_call_operand.hbm [shape: bf16[3,96,96], index: 1, kind: input, shape index: {}]   ;;  %s4390_s2 = inlined_call_operand.vmem [shape: f32[1,32], index: 2, kind: input, shape index: {}]   ;;  %s4391_s3 = inlined_call_operand.<no memory space> [shape: f32[1], index: 3, kind: input, shape index: {}]   ;;  %s4392_s4 = inlined_call_operand.hbm [shape: f32[2,16,16,128], index: 4, kind: output, shape index: {}]  }
   0x1   :  { %9 = sst [smem:[#allocation3]] %s4391_s3 }
   0x2   :  { %10 = vsyncpa [#allocation5], 0 }
   0x3   :  { %12 = vsyncpa [#allocation5 + $0x1], 0 }
   0x4   :  { %13 = vsyncpa [#allocation8], 0 }
   0x5   :  { %14 = vsyncpa [#allocation6], 0 }
   0x6   :  { %16 = vsyncpa [#allocation6 + $0x1], 0  ;;  %s3396_s17 = smov 0   ;;  %s3398_s18 = smov 0  }
   0x7   :  { %s3400_s19 = smov 0   ;;  %s3402_s20 = smov 0  }
   0x8 LB: > { %s3417_s3 = sadd.s32 4294967295, %s3356_s20   ;;  %s2600_s21 = sadd.s32 4294967294, %s3356_s20   ;;  %s3356_s20 = sphi %s3402_s20, %s4402_s20   ;;  %s3352_s19 = sphi %s3400_s19, %s4401_s19   ;;  %s3348_s18 = sphi %s3398_s18, %s4400_s18   ;;  %s3344_s17 = sphi %s3396_s17, %s4399_s17  }
   0x9   : > { %p42_p0 = scmp.ne.s32.totalorder %s3348_s18, %s3344_s17  ;;  %p43_p1 = scmp.eq.s32.totalorder %s3417_s3, 0 }
   0xa   : > { %p129_p2 = scmp.eq.s32.totalorder %s3417_s3, 1  ;;  %p135_p3 = scmp.eq.s32.totalorder %s2600_s21, 1 }
   0xb   : > { %p3426_p4 = por %p43_p1, %p42_p0  ;;  %p2601_p5 = scmp.ge.s32.totalorder %s3356_s20, 1 }
   0xc   : > { %p3431_p6 = por %p135_p3, %p42_p0  ;;  %p142_p7 = scmp.lt.s32.totalorder %s3356_s20, 3 }
   0xd   : > { %s153_s26 = sshll.u32 %s4389_s1, 4  ;;  %s3358_s28 = smov [#allocation7]   ;;  %s154_s26 = int_to_ptr.hbm [resolvable:$true] %s153_s26 }
   0xe   : > { %p3439_p8 = pnand %p2601_p5, %p142_p7  ;;  %s155_s29 = sshll.u32 %s3358_s28, 4  ;;  %s156_s29 = int_to_ptr.vmem [resolvable:$true] %s155_s29 }
   0xf   : > { %s3449_s30 = sadd.s32 1, %s3356_s20   ;;  %s3359_s5 = smov 64  }
  0x10   : > { %p3166_p9 = pneg %p3439_p8  ;;  %s3360_s6 = smov 4  }
  0x11   : > { %s26_s7 = ssub.s32 %s3356_s20, %s3449_s30  ;;  %s29_s8 = sadd.s32 1, %s3352_s19 }
  0x12   : > { %p3167_p10 = pnand %p3166_p9, %p43_p1  ;;  %p27_p12 = scmp.eq.s32.totalorder %s26_s7, 0 }
  0x13   : > { %p36_p13 = scmp.ne.s32.totalorder %s3352_s19, %s3348_s18  ;;  %p37_p0 = scmp.eq.s32.totalorder %s3356_s20, 0 }
  0x14   : > { %3169 = dma.hbm_to_vmem [thread:$0]  (!%p3167_p10), %s154_s26, 2304, %s156_s29, [#allocation8], %s3359_s5, %s3359_s5, %s3360_s6  }
  0x15   : > { %p3179_p3 = scmp.lt.s32.totalorder %s3356_s20, 2  ;;  %p38_p5 = por %p37_p0, %p36_p13 }
  0x16   : > { %s3459_s9 = scalar_select %p27_p12, %s3352_s19, %s29_s8  }
  0x17   : > { %p3463_p7 = por %p129_p2, %p36_p13  ;;  %s175_s11 = sand.u32 1, %s3352_s19  }
  0x18   : > { %s3048_s12 = sshll.u32 %s3356_s20, 8  ;;  %s2604_s13 = sshll.u32 %s175_s11, 8 }
  0x19   : > { %s184_s16 = scalar_lea.hbm %s4388_s0, %s3048_s12  ;;  %s179_s24 = scalar_lea.vmem [#allocation4], %s2604_s13 }
  0x1a   : > { %s185_s21 = sshll.u32 %s184_s16, 4  ;;  %s187_s25 = sshll.u32 %s179_s24, 4  ;;  %s186_s21 = int_to_ptr.hbm [resolvable:$true] %s185_s21  ;;  %s188_s25 = int_to_ptr.vmem [resolvable:$true] %s187_s25 }
  0x1b   : > { %p3474_p9 = pnand %p3179_p3, %p38_p5  ;;  %s176_s28 = scalar_lea.sflag [#allocation5], %s175_s11 }
  0x1c   : > { %s3256_s29 = sshra.s32 %s186_s21, 4  ;;  %s3263_s8 = scalar_lea.hbm %s4388_s0, 512  ;;  %s3257_s29 = int_to_ptr.hbm [resolvable:$true] %s3256_s29 }
  0x1d   : > { %s3258_s5 = scalar_lea.hbm %s3257_s29, 256  ;;  %p3260_p10 = pneg %p3474_p9 }
  0x1e   : > { %p3259_p2 = scmp.ne.s32.totalorder %s3257_s29, %s3258_s5  ;;  %p3264_p0 = scmp.lt.s32.totalorder %s3257_s29, %s4388_s0 }
  0x1f   : > { %p3265_p3 = scmp.lt.s32.totalorder %s3263_s8, %s3258_s5 }
  0x20   : > { %p3261_p12 = pnand %p3260_p10, %p3259_p2 }
  0x21   : > { %p3266_p5 = por %p3265_p3, %p3264_p0 }
  0x22   : > { %p3262_p13 = pneg %p3261_p12 }
  0x24   : > { %p3267_p11 = pnand %p3266_p5, %p3262_p13 }
  0x26   : > { %3270 = shalt.err (!%p3267_p11)
}
  0x27   : > { %s3361_s11 = smov 128   ;;  %s3362_s14 = smov 8  }
  0x28   : > { %3173 = dma.hbm_to_vmem [thread:$0]  (!%p3474_p9), %s186_s21, 4096, %s188_s25, %s176_s28, %s3361_s11, %s3361_s11, %s3362_s14  }
  0x29   : > { %199 = sbr.rel (%p3439_p8) target bundleno = 765 (0x2fd), region = 36  ;;  %s3491_s15 = sand.u32 (!%p3439_p8), 1, %s3348_s18  }
  0x2a   : > { %s2608_s16 = sshll.u32 (!%p3439_p8), %s3491_s15, 8  ;;  %s202_s24 = scalar_lea.sflag (!%p3439_p8), [#allocation5], %s3491_s15 }
  0x2b   : > { %s3497_s29 = scalar_lea.vmem (!%p3439_p8), [#allocation4], %s2608_s16 }
  0x2e   : > { %3331 = dma.done.wait (%p3426_p4), %s202_s24, 4096  }
  0x2f   : > { %3333 = vsyncadd (%p3426_p4), %s202_s24, 4294963200 }
  0x30   : > { %3335 = dma.done.wait (%p43_p1), [#allocation8], 2304  }
  0x31   : > { %3337 = vsyncadd (%p43_p1), [#allocation8], 4294964992  ;;  %vm237_vm0 = vcmask 781312   ;;  %v3363_v0 = vmov 0   ;;  %v3108_v1 = vld [vmem:[#allocation7 + $0x58] sm:$0xff]  ;;  %v3519_v2 = vld [vmem:[#allocation7 + $0x28] sm:$0xff] }
  0x32   : > { %238 = vst.msk [vmem:[#allocation2] sm:$0xf] %vm237_vm0, %v3363_v0  ;;  %v3521_v3 = vld [vmem:[#allocation7 + $0x88] sm:$0xff]  ;;  %710 = vmatpush.bf16.msra.mxu0 %v3108_v1  ;;  %3140 = vmatpush.bf16.msra.mxu3 %v3108_v1  ;;  %v3107_v4 = vld [vmem:[#allocation7 + $0x50] sm:$0xff]  ;;  %v3531_v5 = vld [vmem:[#allocation7 + $0x20] sm:$0xff]  ;;  %vm635_vm1 = vcmask 785408  }
  0x33   : > { %239 = vst.msk [vmem:[#allocation2 + $0x4] sm:$0xf] %vm237_vm0, %v3363_v0  ;;  %1067 = vmatpush.bf16.msra.mxu1 %v3519_v2  ;;  %1486 = vmatpush.bf16.msra.mxu2 %v3521_v3  ;;  %v3533_v6 = vld [vmem:[#allocation7 + $0x80] sm:$0xff]  ;;  %v3106_v7 = vld [vmem:[#allocation7 + $0x48] sm:$0xff]  ;;  %v3548_v11 = vld [vmem:[#allocation7 + $0x18] sm:$0xff]  ;;  %s3364_s22 = smov 96  }
  0x34   : > { %240 = vst.msk [vmem:[#allocation2 + $0x8] sm:$0xf] %vm237_vm0, %v3363_v0  ;;  %v262_v8 = vld [vmem:[%s3497_s29] sm:$0xff]  ;;  %v263_v9 = vld [vmem:[%s3497_s29 + $0x8] sm:$0xff]  ;;  %v3550_v12 = vld [vmem:[#allocation7 + $0x78] sm:$0xff]  ;;  %vm1934_vm2 = vcmask 1046528  }
  0x35   : > { %242 = vst.msk [vmem:[#allocation2 + $0xcc] sm:$0xf] %vm237_vm0, %v3363_v0  ;;  %v286_v10 = vld [vmem:[%s3497_s29 + $0xc0] sm:$0xff]  ;;  %v294_v13 = vpack.c.bf16 %v262_v8, %v262_v8  ;;  %v295_v14 = vpack.c.bf16 %v263_v9, %v263_v9  ;;  %v287_v15 = vld [vmem:[%s3497_s29 + $0xc8] sm:$0xff]  ;;  %v3561_v19 = vld [vmem:[#allocation7 + $0x10] sm:$0xff]  ;;  %vm1693_vm3 = vcmask 1040384  }
  0x36   : > { %243 = vst.msk [vmem:[#allocation2 + $0xd0] sm:$0xf] %vm237_vm0, %v3363_v0  ;;  %711 = vmatpush.bf16.msra.mxu0 %v3107_v4  ;;  %3141 = vmatpush.bf16.msra.mxu3 %v3107_v4  ;;  %v318_v16 = vpack.c.bf16 %v286_v10, %v286_v10  ;;  %v319_v17 = vpack.c.bf16 %v287_v15, %v287_v15  ;;  %v3105_v18 = vld [vmem:[#allocation7 + $0x40] sm:$0xff]  ;;  %v3563_v20 = vld [vmem:[#allocation7 + $0x70] sm:$0xff]  ;;  %v3104_v22 = vld [vmem:[#allocation7 + $0x38] sm:$0xff]  ;;  %s3365_s27 = smov 64  }
  0x37   : > { %244 = vst.msk [vmem:[#allocation2 + $0xd4] sm:$0xf] %vm237_vm0, %v3363_v0  ;;  %1068 = vmatpush.bf16.msra.mxu1 %v3531_v5  ;;  %1487 = vmatpush.bf16.msra.mxu2 %v3533_v6  ;;  %v264_v21 = vld [vmem:[%s3497_s29 + $0x10] sm:$0xff]  ;;  %v265_v23 = vld [vmem:[%s3497_s29 + $0x18] sm:$0xff]  ;;  %v3074_v24 = vld [vmem:[#allocation7 + $0x8] sm:$0xff]  ;;  %s2179_s21 = sld [smem:[#allocation3]] }
  0x38   : > { %246 = vst.msk [vmem:[#allocation2 + $0x14] sm:$0xf] %vm237_vm0, %v3363_v0  ;;  %v3575_v25 = vld [vmem:[#allocation7 + $0x68] sm:$0xff]  ;;  %v288_v26 = vld [vmem:[%s3497_s29 + $0xd0] sm:$0xff]  ;;  %v296_v27 = vpack.c.bf16 %v264_v21, %v264_v21  ;;  %v266_v28 = vld [vmem:[%s3497_s29 + $0x20] sm:$0xff]  ;;  %v297_v29 = vpack.c.bf16 %v265_v23, %v265_v23  ;;  %s4041_s28 = scalar_lea.vmem [#allocation9], %s2608_s16 }
  0x39   : > { %247 = vst.msk [vmem:[#allocation2 + $0x20] sm:$0xf] %vm237_vm0, %v3363_v0  ;;  %v3103_v30 = vld [vmem:[#allocation7 + $0x30] sm:$0xff]  ;;  %v320_v31 = vpack.c.bf16 %v288_v26, %v288_v26  ;;  %v289_v32 = vld [vmem:[%s3497_s29 + $0xd8] sm:$0xff]  ;;  %v267_v33 = vld [vmem:[%s3497_s29 + $0x28] sm:$0xff]  ;;  %v298_v36 = vpack.c.bf16 %v266_v28, %v266_v28  ;;  %s3139_s7 = sshll.u32 %s3417_s3, 8 }
  0x3a   : > { %248 = vst.msk [vmem:[#allocation2 + $0x2c] sm:$0xf] %vm237_vm0, %v3363_v0  ;;  %712 = vmatpush.bf16.msra.mxu0 %v3106_v7  ;;  %3142 = vmatpush.bf16.msra.mxu3 %v3106_v7  ;;  %v3073_v34 = vld [vmem:[#allocation7] sm:$0xff]  ;;  %v321_v37 = vpack.c.bf16 %v289_v32, %v289_v32  ;;  %v299_v40 = vpack.c.bf16 %v267_v33, %v267_v33  ;;  %v3049_v41 = vld [vmem:[#allocation2] sm:$0xff]  ;;  %v268_v45 = vld [vmem:[%s3497_s29 + $0x30] sm:$0xff]  ;;  %s2513_s13 = scalar_lea.hbm %s4392_s4, %s3139_s7  ;;  %s2514_s11 = sshll.u32 %s4041_s28, 4  ;;  %s2515_s11 = int_to_ptr.vmem [resolvable:$true] %s2514_s11 }
  0x3b   : > { %249 = vst.msk [vmem:[#allocation2 + $0x38] sm:$0xf] %vm237_vm0, %v3363_v0  ;;  %1069 = vmatpush.bf16.msra.mxu1 %v3548_v11  ;;  %1488 = vmatpush.bf16.msra.mxu2 %v3550_v12  ;;  %v3590_v35 = vld [vmem:[#allocation7 + $0x60] sm:$0xff]  ;;  %v291_v44 = vld [vmem:[%s3497_s29 + $0xe8] sm:$0xff]  ;;  %v269_v48 = vld [vmem:[%s3497_s29 + $0x38] sm:$0xff]  ;;  %v300_v49 = vpack.c.bf16 %v268_v45, %v268_v45  ;;  %s2516_s14 = sshll.u32 %s2513_s13, 4  ;;  %s2517_s14 = int_to_ptr.hbm [resolvable:$true] %s2516_s14 }
  0x3c   : > { %250 = vst.msk [vmem:[#allocation2 + $0x44] sm:$0xf] %vm237_vm0, %v3363_v0  ;;  %v290_v43 = vld [vmem:[%s3497_s29 + $0xe0] sm:$0xff]  ;;  %v323_v47 = vpack.c.bf16 %v291_v44, %v291_v44  ;;  %v301_v50 = vpack.c.bf16 %v269_v48, %v269_v48  ;;  %v292_v55 = vld [vmem:[%s3497_s29 + $0xf0] sm:$0xff]  ;;  %v293_v63 = vld [vmem:[%s3497_s29 + $0xf8] sm:$0xff]  ;;  %s2502_s16 = scalar_lea.sflag [#allocation6], %s3491_s15 }
  0x3d   : > { %251 = vst.msk [vmem:[#allocation2 + $0x50] sm:$0xf] %vm237_vm0, %v3363_v0  ;;  %v322_v46 = vpack.c.bf16 %v290_v43, %v290_v43  ;;  %v270_v56 = vld [vmem:[%s3497_s29 + $0x40] sm:$0xff]  ;;  %v324_v57 = vpack.c.bf16 %v292_v55, %v292_v55  ;;  %v325_v1 = vpack.c.bf16 %v293_v63, %v293_v63  ;;  %v284_v7 = vld [vmem:[%s3497_s29 + $0xb0] sm:$0xff]  ;;  %v285_v8 = vld [vmem:[%s3497_s29 + $0xb8] sm:$0xff]  ;;  %s3300_s3 = sshra.s32 %s2517_s14, 4  ;;  %s3301_s3 = int_to_ptr.hbm [resolvable:$true] %s3300_s3 }
  0x3e   : > { %252 = vst.msk [vmem:[#allocation2 + $0x5c] sm:$0xf] %vm237_vm0, %v3363_v0  ;;  %713 = vmatpush.bf16.msra.mxu0 %v3105_v18  ;;  %3143 = vmatpush.bf16.msra.mxu3 %v3105_v18  ;;  %v302_v58 = vpack.c.bf16 %v270_v56, %v270_v56  ;;  %v272_v9 = vld [vmem:[%s3497_s29 + $0x50] sm:$0xff]  ;;  %v316_v10 = vpack.c.bf16 %v284_v7, %v284_v7  ;;  %v277_v32 = vld [vmem:[%s3497_s29 + $0x78] sm:$0xff]  ;;  %s3302_s24 = scalar_lea.hbm %s3301_s3, 256  ;;  %p3307_p11 = scmp.lt.s32.totalorder %s3301_s3, %s4392_s4 }
  0x3f   : > { %253 = vst.msk [vmem:[#allocation2 + $0x68] sm:$0xf] %vm237_vm0, %v3363_v0  ;;  %1070 = vmatpush.bf16.msra.mxu1 %v3561_v19  ;;  %1489 = vmatpush.bf16.msra.mxu2 %v3563_v20  ;;  %p3303_p1 = scmp.ne.s32.totalorder %s3301_s3, %s3302_s24 }
  0x40   : > { %254 = vst.msk [vmem:[#allocation2 + $0x74] sm:$0xf] %vm237_vm0, %v3363_v0 }
  0x41   : > { %326 = vst.msk [vmem:[#allocation2 + $0xc] sm:$0xf] %vm237_vm0, %v294_v13  ;;  %v304_v13 = vpack.c.bf16 %v272_v9, %v272_v9  ;;  %p3304_p4 = pnand %p3303_p1, %p3463_p7 }
  0x42   : > { %327 = vst.msk [vmem:[#allocation2 + $0x10] sm:$0xf] %vm237_vm0, %v295_v14  ;;  %714 = vmatpush.bf16.msra.mxu0 %v3104_v22  ;;  %3144 = vmatpush.bf16.msra.mxu3 %v3104_v22 }
  0x43   : > { %350 = vst.msk [vmem:[#allocation2 + $0x9c] sm:$0xf] %vm237_vm0, %v318_v16  ;;  %1071 = vmatpush.bf16.msra.mxu1 %v3074_v24  ;;  %1490 = vmatpush.bf16.msra.mxu2 %v3575_v25  ;;  %p3305_p8 = pneg %p3304_p4 }
  0x44   : > { %351 = vst.msk [vmem:[#allocation2 + $0xa0] sm:$0xf] %vm237_vm0, %v319_v17 }
  0x45   : > { %255 = vst.msk [vmem:[#allocation2 + $0x80] sm:$0xf] %vm237_vm0, %v3363_v0 }
  0x46   : > { %256 = vst.msk [vmem:[#allocation2 + $0x8c] sm:$0xf] %vm237_vm0, %v3363_v0  ;;  %715 = vmatpush.bf16.msra.mxu0 %v3103_v30  ;;  %3145 = vmatpush.bf16.msra.mxu3 %v3103_v30 }
  0x47   : > { %257 = vst.msk [vmem:[#allocation2 + $0x98] sm:$0xf] %vm237_vm0, %v3363_v0  ;;  %1072 = vmatpush.bf16.msra.mxu1 %v3073_v34  ;;  %1491 = vmatpush.bf16.msra.mxu2 %v3590_v35 }
  0x48   : > { %258 = vst.msk [vmem:[#allocation2 + $0xa4] sm:$0xf] %vm237_vm0, %v3363_v0  ;;  %v3050_v53 = vld [vmem:[#allocation2 + $0x8] sm:$0xff] }
  0x49   : > { %259 = vst.msk [vmem:[#allocation2 + $0xb0] sm:$0xf] %vm237_vm0, %v3363_v0  ;;  %v3079_v38 = vld [vmem:[#allocation2 + $0xc] sm:$0xff] }
  0x4a   : > { %260 = vst.msk [vmem:[#allocation2 + $0xbc] sm:$0xf] %vm237_vm0, %v3363_v0  ;;  %3146 = vmatpush.bf16.msrb.mxu3 %v3519_v2  ;;  %2731 = vmatmul.msk.bf16.vlgmr.msra.gmra.mxu0 %vm635_vm1, %v3079_v38  ;;  %v3051_v61 = vld [vmem:[#allocation2 + $0x10] sm:$0xff] }
  0x4b   : > { %261 = vst.msk [vmem:[#allocation2 + $0xc8] sm:$0xf] %vm237_vm0, %v3363_v0  ;;  %v3097_v39 = vld [vmem:[#allocation2 + $0x9c] sm:$0xff]  ;;  %2875 = vmatmul.msk.bf16.vlgmr.msra.gmra.mxu1 %vm635_vm1, %v3049_v41 }
  0x4c   : > { %328 = vst.msk [vmem:[#allocation2 + $0x18] sm:$0xf] %vm237_vm0, %v296_v27  ;;  %2749 = vmatmul.msk.bf16.vlgmr.msra.gmra.mxu3 %vm635_vm1, %v3097_v39  ;;  %v271_v0 = vld [vmem:[%s3497_s29 + $0x48] sm:$0xff]  ;;  %v278_v39 = vld [vmem:[%s3497_s29 + $0x80] sm:$0xff] }
  0x4d   : > { %329 = vst.msk [vmem:[#allocation2 + $0x1c] sm:$0xf] %vm237_vm0, %v297_v29  ;;  %v303_v2 = vpack.c.bf16 %v271_v0, %v271_v0 }
  0x4e   : > { %352 = vst.msk [vmem:[#allocation2 + $0xa8] sm:$0xf] %vm237_vm0, %v320_v31  ;;  %3147 = vmatpush.bf16.msrb.mxu3 %v3531_v5  ;;  %v276_v31 = vld [vmem:[%s3497_s29 + $0x70] sm:$0xff] }
  0x4f   : > { %330 = vst.msk [vmem:[#allocation2 + $0x24] sm:$0xf] %vm237_vm0, %v298_v36  ;;  %v308_v33 = vpack.c.bf16 %v276_v31, %v276_v31  ;;  %v3068_v36 = vld [vmem:[#allocation2 + $0x98] sm:$0xff] }
  0x50   : > { %353 = vst.msk [vmem:[#allocation2 + $0xac] sm:$0xf] %vm237_vm0, %v321_v37 }
  0x51   : > { %331 = vst.msk [vmem:[#allocation2 + $0x28] sm:$0xf] %vm237_vm0, %v299_v40  ;;  %v310_v40 = vpack.c.bf16 %v278_v39, %v278_v39 }
  0x52   : > { %3148 = vmatpush.bf16.msrb.mxu3 %v3548_v11  ;;  %354 = vst.msk [vmem:[#allocation2 + $0xb4] sm:$0xf] %vm237_vm0, %v322_v46  ;;  %v317_v11 = vpack.c.bf16 %v285_v8, %v285_v8 }
  0x53   : > { %v3080_v51 = vld [vmem:[#allocation2 + $0x14] sm:$0xff]  ;;  %355 = vst.msk [vmem:[#allocation2 + $0xb8] sm:$0xf] %vm237_vm0, %v323_v47 }
  0x54   : > { %v3109_v42 = vld [vmem:[#allocation2 + $0x18] sm:$0xff]  ;;  %332 = vst.msk [vmem:[#allocation2 + $0x30] sm:$0xf] %vm237_vm0, %v300_v49 }
  0x55   : > { %3019 = vmatmul.msk.bf16.vlgmr.msra.gmra.mxu2 %vm635_vm1, %v3109_v42  ;;  %v3098_v52 = vld [vmem:[#allocation2 + $0xa4] sm:$0xff]  ;;  %333 = vst.msk [vmem:[#allocation2 + $0x34] sm:$0xf] %vm237_vm0, %v301_v50  ;;  %v3081_v59 = vld [vmem:[#allocation2 + $0x1c] sm:$0xff] }
  0x56   : > { %3149 = vmatpush.bf16.msrb.mxu3 %v3561_v19  ;;  %v3110_v54 = vld [vmem:[#allocation2 + $0x20] sm:$0xff]  ;;  %356 = vst.msk [vmem:[#allocation2 + $0xc0] sm:$0xf] %vm237_vm0, %v324_v57  ;;  %v3052_v5 = vld [vmem:[#allocation2 + $0x18] sm:$0xff] }
  0x57   : > { %v3099_v60 = vld [vmem:[#allocation2 + $0xac] sm:$0xff]  ;;  %334 = vst.msk [vmem:[#allocation2 + $0x3c] sm:$0xf] %vm237_vm0, %v302_v58  ;;  %v3053_v17 = vld [vmem:[#allocation2 + $0x20] sm:$0xff]  ;;  %v274_v19 = vld [vmem:[%s3497_s29 + $0x60] sm:$0xff] }
  0x58   : > { %v3111_v62 = vld [vmem:[#allocation2 + $0x28] sm:$0xff]  ;;  %357 = vst.msk [vmem:[#allocation2 + $0xc4] sm:$0xf] %vm237_vm0, %v325_v1  ;;  %v3069_v42 = vld [vmem:[#allocation2 + $0xa0] sm:$0xff] }
  0x59   : > { %335 = vst.msk [vmem:[#allocation2 + $0x40] sm:$0xf] %vm237_vm0, %v303_v2  ;;  %v3054_v23 = vld [vmem:[#allocation2 + $0x28] sm:$0xff] }
  0x5a   : > { %3150 = vmatpush.bf16.msrb.mxu3 %v3074_v24  ;;  %2732 = vmatmul.msk.bf16.gmra.mxu0 %vm635_vm1, %v3080_v51  ;;  %v3100_v4 = vld [vmem:[#allocation2 + $0xb4] sm:$0xff]  ;;  %348 = vst.msk [vmem:[#allocation2 + $0x90] sm:$0xf] %vm237_vm0, %v316_v10  ;;  %v3070_v57 = vld [vmem:[#allocation2 + $0xa8] sm:$0xff] }
  0x5b   : > { %2876 = vmatmul.msk.bf16.gmra.mxu1 %vm635_vm1, %v3050_v53  ;;  %v3083_v15 = vld [vmem:[#allocation2 + $0x2c] sm:$0xff]  ;;  %349 = vst.msk [vmem:[#allocation2 + $0x94] sm:$0xf] %vm237_vm0, %v317_v11  ;;  %v279_v53 = vld [vmem:[%s3497_s29 + $0x88] sm:$0xff] }
  0x5c   : > { %2750 = vmatmul.msk.bf16.gmra.mxu3 %vm635_vm1, %v3098_v52  ;;  %336 = vst.msk [vmem:[#allocation2 + $0x48] sm:$0xf] %vm237_vm0, %v304_v13  ;;  %v3084_v21 = vld [vmem:[#allocation2 + $0x34] sm:$0xff]  ;;  %v280_v13 = vld [vmem:[%s3497_s29 + $0x90] sm:$0xff] }
  0x5d   : > { %v3101_v16 = vld [vmem:[#allocation2 + $0xbc] sm:$0xff]  ;;  %v3055_v29 = vld [vmem:[#allocation2 + $0x30] sm:$0xff]  ;;  %340 = vst.msk [vmem:[#allocation2 + $0x60] sm:$0xf] %vm237_vm0, %v308_v33 }
  0x5e   : > { %3151 = vmatpush.bf16.msrb.mxu3 %v3073_v34  ;;  %v3113_v18 = vld [vmem:[#allocation2 + $0x38] sm:$0xff]  ;;  %v309_v34 = vpack.c.bf16 %v277_v32, %v277_v32  ;;  %342 = vst.msk [vmem:[#allocation2 + $0x6c] sm:$0xf] %vm237_vm0, %v310_v40 }
  0x5f   : > { %v3102_v22 = vld [vmem:[#allocation2 + $0xc4] sm:$0xff]  ;;  %v3056_v37 = vld [vmem:[#allocation2 + $0x38] sm:$0xff] }
  0x60   : > { %v3114_v24 = vld [vmem:[#allocation2 + $0x40] sm:$0xff]  ;;  %341 = vst.msk [vmem:[#allocation2 + $0x64] sm:$0xf] %vm237_vm0, %v309_v34 }
  0x61   : > { %v3085_v27 = vld [vmem:[#allocation2 + $0x3c] sm:$0xff] }
  0x62   : > { %3152 = vmatpush.bf16.msra.mxu3 %v3521_v3  ;;  %v3082_v3 = vld [vmem:[#allocation2 + $0x24] sm:$0xff]  ;;  %v3067_v28 = vld [vmem:[#allocation2 + $0x90] sm:$0xff] }
  0x63   : > { %v3057_v44 = vld [vmem:[#allocation2 + $0x40] sm:$0xff] }
  0x65   : > { %3020 = vmatmul.msk.bf16.gmra.mxu2 %vm635_vm1, %v3110_v54  ;;  %v311_v54 = vpack.c.bf16 %v279_v53, %v279_v53 }
  0x66   : > { %3153 = vmatpush.bf16.msra.mxu3 %v3533_v6  ;;  %v3112_v6 = vld [vmem:[#allocation2 + $0x30] sm:$0xff] }
  0x67   : > { %343 = vst.msk [vmem:[#allocation2 + $0x70] sm:$0xf] %vm237_vm0, %v311_v54  ;;  %v3118_v0 = vld [vmem:[#allocation2 + $0x60] sm:$0xff] }
  0x68   : > { %v3090_v40 = vld [vmem:[#allocation2 + $0x64] sm:$0xff] }
  0x6a   : > { %3154 = vmatpush.bf16.msra.mxu3 %v3550_v12  ;;  %2733 = vmatmul.msk.bf16.gmra.mxu0 %vm635_vm1, %v3081_v59  ;;  %v273_v12 = vld [vmem:[%s3497_s29 + $0x58] sm:$0xff] }
  0x6b   : > { %2877 = vmatmul.msk.bf16.gmra.mxu1 %vm635_vm1, %v3051_v61  ;;  %v305_v14 = vpack.c.bf16 %v273_v12, %v273_v12 }
  0x6c   : > { %2751 = vmatmul.msk.bf16.gmra.mxu3 %vm635_vm1, %v3099_v60 }
  0x6d   : > { %337 = vst.msk [vmem:[#allocation2 + $0x4c] sm:$0xf] %vm237_vm0, %v305_v14  ;;  %v281_v14 = vld [vmem:[%s3497_s29 + $0x98] sm:$0xff] }
  0x6e   : > { %3155 = vmatpush.bf16.msra.mxu3 %v3563_v20  ;;  %v306_v20 = vpack.c.bf16 %v274_v19, %v274_v19  ;;  %v3089_v19 = vld [vmem:[#allocation2 + $0x5c] sm:$0xff]  ;;  %v3120_v53 = vld [vmem:[#allocation2 + $0x70] sm:$0xff] }
  0x70   : > { %338 = vst.msk [vmem:[#allocation2 + $0x54] sm:$0xf] %vm237_vm0, %v306_v20  ;;  %v3071_v20 = vld [vmem:[#allocation2 + $0xb0] sm:$0xff] }
  0x72   : > { %3156 = vmatpush.bf16.msra.mxu3 %v3575_v25  ;;  %v275_v25 = vld [vmem:[%s3497_s29 + $0x68] sm:$0xff] }
  0x73   : > { %v307_v26 = vpack.c.bf16 %v275_v25, %v275_v25 }
  0x74   : > { %v3115_v30 = vld [vmem:[#allocation2 + $0x48] sm:$0xff] }
  0x75   : > { %3021 = vmatmul.msk.bf16.gmra.mxu2 %vm635_vm1, %v3111_v62  ;;  %339 = vst.msk [vmem:[#allocation2 + $0x58] sm:$0xf] %vm237_vm0, %v307_v26  ;;  %v3087_v41 = vld [vmem:[#allocation2 + $0x4c] sm:$0xff] }
  0x76   : > { %3157 = vmatpush.bf16.msra.mxu3 %v3590_v35  ;;  %v3086_v35 = vld [vmem:[#allocation2 + $0x44] sm:$0xff] }
  0x77   : > { %v3116_v38 = vld [vmem:[#allocation2 + $0x50] sm:$0xff]  ;;  %v3058_v59 = vld [vmem:[#allocation2 + $0x48] sm:$0xff] }
  0x7a   : > { %2734 = vmatmul.msk.bf16.gmra.mxu0 %vm635_vm1, %v3082_v3 }
  0x7b   : > { %2878 = vmatmul.msk.bf16.gmra.mxu1 %vm635_vm1, %v3052_v5 }
  0x7c   : > { %2752 = vmatmul.msk.bf16.gmra.mxu3 %vm635_vm1, %v3100_v4  ;;  %v3117_v46 = vld [vmem:[#allocation2 + $0x58] sm:$0xff] }
  0x7d   : > { %v3088_v56 = vld [vmem:[#allocation2 + $0x54] sm:$0xff] }
  0x85   : > { %3022 = vmatmul.msk.bf16.gmra.mxu2 %vm635_vm1, %v3112_v6 }
  0x8a   : > { %2735 = vmatmul.msk.bf16.gmra.mxu0 %vm635_vm1, %v3083_v15  ;;  %v312_v15 = vpack.c.bf16 %v280_v13, %v280_v13 }
  0x8b   : > { %2879 = vmatmul.msk.bf16.gmra.mxu1 %vm635_vm1, %v3053_v17 }
  0x8c   : > { %2753 = vmatmul.msk.bf16.gmra.mxu3 %vm635_vm1, %v3101_v16  ;;  %v313_v16 = vpack.c.bf16 %v281_v14, %v281_v14  ;;  %344 = vst.msk [vmem:[#allocation2 + $0x78] sm:$0xf] %vm237_vm0, %v312_v15 }
  0x8e   : > { %345 = vst.msk [vmem:[#allocation2 + $0x7c] sm:$0xf] %vm237_vm0, %v313_v16 }
  0x95   : > { %3023 = vmatmul.msk.bf16.gmra.mxu2 %vm635_vm1, %v3113_v18  ;;  %v3121_v14 = vld [vmem:[#allocation2 + $0x78] sm:$0xff] }
  0x9a   : > { %2736 = vmatmul.msk.bf16.gmra.mxu0 %vm635_vm1, %v3084_v21 }
  0x9b   : > { %2880 = vmatmul.msk.bf16.gmra.mxu1 %vm635_vm1, %v3054_v23  ;;  %v3059_v23 = vld [vmem:[#allocation2 + $0x50] sm:$0xff] }
  0x9c   : > { %2754 = vmatmul.msk.bf16.gmra.mxu3 %vm635_vm1, %v3102_v22 }
  0xa5   : > { %3024 = vmatmul.msk.bf16.gmra.mxu2 %vm635_vm1, %v3114_v24 }
  0xaa   : > { %2737 = vmatmul.msk.bf16.gmra.mxu0 %vm635_vm1, %v3085_v27 }
  0xab   : > { %2881 = vmatmul.msk.bf16.gmra.mxu1 %vm635_vm1, %v3055_v29 }
  0xac   : > { %2893 = vmatmul.msk.bf16.vlgmr.msrb.gmra.mxu3 %vm635_vm1, %v3067_v28  ;;  %v3119_v28 = vld [vmem:[#allocation2 + $0x68] sm:$0xff] }
  0xb5   : > { %3025 = vmatmul.msk.bf16.gmra.mxu2 %vm635_vm1, %v3115_v30 }
  0xba   : > { %2738 = vmatmul.msk.bf16.gmra.mxu0 %vm635_vm1, %v3086_v35  ;;  %v282_v35 = vld [vmem:[%s3497_s29 + $0xa0] sm:$0xff] }
  0xbb   : > { %2882 = vmatmul.msk.bf16.gmra.mxu1 %vm635_vm1, %v3056_v37 }
  0xbc   : > { %2894 = vmatmul.msk.bf16.gmra.mxu3 %vm635_vm1, %v3068_v36  ;;  %v314_v36 = vpack.c.bf16 %v282_v35, %v282_v35 }
  0xbe   : > { %346 = vst.msk [vmem:[#allocation2 + $0x84] sm:$0xf] %vm237_vm0, %v314_v36  ;;  %v3062_v36 = vld [vmem:[#allocation2 + $0x68] sm:$0xff] }
  0xc5   : > { %3026 = vmatmul.msk.bf16.gmra.mxu2 %vm635_vm1, %v3116_v38 }
  0xc7   : > { %v717_v43 = vpop.f32.mrf.mxu0 }
  0xc8   : > { %v1074_v45 = vpop.f32.mrf.mxu1 }
  0xc9   : > { %v1075_v48 = vadd.f32 %v1074_v45, %v717_v43  ;;  %v3060_v43 = vld [vmem:[#allocation2 + $0x58] sm:$0xff] }
  0xca   : > { %2739 = vmatmul.msk.bf16.gmra.mxu0 %vm635_vm1, %v3087_v41  ;;  %v3072_v41 = vld [vmem:[#allocation2 + $0xb8] sm:$0xff] }
  0xcb   : > { %2883 = vmatmul.msk.bf16.gmra.mxu1 %vm635_vm1, %v3057_v44 }
  0xcc   : > { %2895 = vmatmul.msk.bf16.gmra.mxu3 %vm635_vm1, %v3069_v42 }
  0xcf   : > { %v3680_v47 = vpop.f32.mrf.mxu3  ;;  %v719_v49 = vpop.f32.mrf.mxu0 }
  0xd0   : > { %v1076_v50 = vpop.f32.mrf.mxu1 }
  0xd1   : > { %v1077_v61 = vadd.f32 %v1076_v50, %v719_v49 }
  0xd5   : > { %3027 = vmatmul.msk.bf16.gmra.mxu2 %vm635_vm1, %v3117_v46 }
  0xd7   : > { %v3688_v55 = vpop.f32.mrf.mxu3  ;;  %v722_v58 = vpop.f32.mrf.mxu0 }
  0xd8   : > { %v1493_v51 = vpop.f32.mrf.mxu2  ;;  %v1079_v60 = vpop.f32.mrf.mxu1 }
  0xd9   : > { %v3683_v52 = vadd.f32 %v1493_v51, %v1075_v48  ;;  %v1080_v6 = vadd.f32 %v1079_v60, %v722_v58 }
  0xda   : > { %2740 = vmatmul.msk.bf16.gmra.mxu0 %vm635_vm1, %v3088_v56 }
  0xdb   : > { %1790 = vrot.lane.b32.xlu0 %v3683_v52, %s3364_s22  ;;  %2884 = vmatmul.msk.bf16.gmra.mxu1 %vm635_vm1, %v3058_v59  ;;  %v1935_v1 = vrot.slane %v3683_v52, 1  ;;  %v1694_v4 = vrot.slane %v3683_v52, 7 }
  0xdc   : > { %2896 = vmatmul.msk.bf16.gmra.mxu3 %vm635_vm1, %v3070_v57 }
  0xdf   : > { %v3696_v3 = vpop.f32.mrf.mxu3  ;;  %v724_v8 = vpop.f32.mrf.mxu0 }
  0xe0   : > { %v1495_v62 = vpop.f32.mrf.mxu2  ;;  %v1081_v10 = vpop.f32.mrf.mxu1 }
  0xe1   : > { %v1614_v63 = vadd.f32 %v1495_v62, %v1077_v61  ;;  %v1082_v25 = vadd.f32 %v1081_v10, %v724_v8  ;;  %v3061_v8 = vld [vmem:[#allocation2 + $0x60] sm:$0xff] }
  0xe3   : > { %1792 = vrot.lane.b32.xlu0 %v1614_v63, %s3364_s22  ;;  %v1936_v2 = vrot.slane %v1614_v63, 1  ;;  %v1695_v5 = vrot.slane %v1614_v63, 7  ;;  %v283_v63 = vld [vmem:[%s3497_s29 + $0xa8] sm:$0xff] }
  0xe5   : > { %3028 = vmatmul.msk.bf16.gmra.mxu2 %vm635_vm1, %v3118_v0  ;;  %v1937_v7 = vsel %vm1934_vm2, %v1935_v1, %v1936_v2  ;;  %v3704_v9 = vsel %vm1693_vm3, %v1694_v4, %v1695_v5  ;;  %v315_v0 = vpack.c.bf16 %v283_v63, %v283_v63  ;;  %v3091_v5 = vld [vmem:[#allocation2 + $0x6c] sm:$0xff] }
  0xe6   : > { %2015 = vrot.lane.b32.xlu2 %v1937_v7, %s3365_s27 }
  0xe7   : > { %v3709_v18 = vpop.f32.mrf.mxu3  ;;  %v727_v22 = vpop.f32.mrf.mxu0  ;;  %347 = vst.msk [vmem:[#allocation2 + $0x88] sm:$0xf] %vm237_vm0, %v315_v0  ;;  %v3063_v0 = vld [vmem:[#allocation2 + $0x70] sm:$0xff] }
  0xe8   : > { %v1498_v11 = vpop.f32.mrf.mxu2  ;;  %v1084_v24 = vpop.f32.mrf.mxu1 }
  0xe9   : > { %v1615_v12 = vadd.f32 %v1498_v11, %v1080_v6  ;;  %v1085_v30 = vadd.f32 %v1084_v24, %v727_v22  ;;  %v3127_v6 = vld [vmem:[#allocation2 + $0xa8] sm:$0xff] }
  0xea   : > { %2741 = vmatmul.msk.bf16.gmra.mxu0 %vm635_vm1, %v3089_v19 }
  0xeb   : > { %v1938_v17 = vrot.slane %v1615_v12, 1  ;;  %2885 = vmatmul.msk.bf16.gmra.mxu1 %vm635_vm1, %v3059_v23 }
  0xec   : > { %2897 = vmatmul.msk.bf16.gmra.mxu3 %vm635_vm1, %v3071_v20 }
  0xed   : > { %v1939_v21 = vsel %vm1934_vm2, %v1936_v2, %v1938_v17 }
  0xee   : > { %2017 = vrot.lane.b32.xlu0 %v1939_v21, %s3365_s27 }
  0xef   : > { %v3722_v29 = vpop.f32.mrf.mxu3  ;;  %v729_v31 = vpop.f32.mrf.mxu0 }
  0xf0   : > { %v1500_v26 = vpop.f32.mrf.mxu2  ;;  %v1086_v32 = vpop.f32.mrf.mxu1 }
  0xf1   : > { %v3717_v27 = vadd.f32 %v1500_v26, %v1082_v25  ;;  %v1087_v48 = vadd.f32 %v1086_v32, %v729_v31  ;;  %v3092_v32 = vld [vmem:[#allocation2 + $0x74] sm:$0xff] }
  0xf3   : > { %1794 = vrot.lane.b32.xlu1 %v3717_v27, %s3364_s22  ;;  %v1697_v39 = vrot.slane %v3717_v27, 7  ;;  %v1940_v50 = vrot.slane %v3717_v27, 1 }
  0xf5   : > { %3029 = vmatmul.msk.bf16.gmra.mxu2 %vm635_vm1, %v3119_v28 }
  0xf7   : > { %v3727_v38 = vpop.f32.mrf.mxu3  ;;  %v732_v42 = vpop.f32.mrf.mxu0 }
  0xf8   : > { %v1503_v33 = vpop.f32.mrf.mxu2  ;;  %v1089_v46 = vpop.f32.mrf.mxu1 }
  0xf9   : > { %v1617_v34 = vadd.f32 %v1503_v33, %v1085_v30  ;;  %v1090_v61 = vadd.f32 %v1089_v46, %v732_v42  ;;  %v3128_v33 = vld [vmem:[#allocation2 + $0xb0] sm:$0xff] }
  0xfa   : > { %2742 = vmatmul.msk.bf16.gmra.mxu0 %vm635_vm1, %v3090_v40 }
  0xfb   : > { %v1698_v37 = vrot.slane %v1617_v34, 7  ;;  %1796 = vrot.lane.b32.xlu1 %v1617_v34, %s3364_s22  ;;  %v1941_v45 = vrot.slane %v1617_v34, 1  ;;  %2886 = vmatmul.msk.bf16.gmra.mxu1 %vm635_vm1, %v3060_v43  ;;  %v3122_v43 = vld [vmem:[#allocation2 + $0x80] sm:$0xff] }
  0xfc   : > { %2898 = vmatmul.msk.bf16.gmra.mxu3 %vm635_vm1, %v3072_v41 }
  0xfd   : > { %v3734_v44 = vsel %vm1693_vm3, %v1697_v39, %v1698_v37  ;;  %v1942_v54 = vsel %vm1934_vm2, %v1940_v50, %v1941_v45 }
  0xff   : > { %v3742_v57 = vpop.f32.mrf.mxu3  ;;  %v734_v59 = vpop.f32.mrf.mxu0 }
 0x100   : > { %v1505_v49 = vpop.f32.mrf.mxu2  ;;  %v1091_v60 = vpop.f32.mrf.mxu1 }
 0x101   : > { %v1618_v51 = vadd.f32 %v1505_v49, %v1087_v48  ;;  %v1092_v11 = vadd.f32 %v1091_v60, %v734_v59  ;;  %v3093_v60 = vld [vmem:[#allocation2 + $0x7c] sm:$0xff] }
 0x103   : > { %v1943_v56 = vrot.slane %v1618_v51, 1  ;;  %2019 = vrot.lane.b32.xlu1 %v1942_v54, %s3365_s27 }
 0x105   : > { %3030 = vmatmul.msk.bf16.gmra.mxu2 %vm635_vm1, %v3120_v53  ;;  %v1944_v58 = vsel %vm1934_vm2, %v1941_v45, %v1943_v56 }
 0x106   : > { %2021 = vrot.lane.b32.xlu2 %v1944_v58, %s3365_s27 }
 0x107   : > { %v3748_v1 = vpop.f32.mrf.mxu3  ;;  %v737_v7 = vpop.f32.mrf.mxu0 }
 0x108   : > { %v1508_v62 = vpop.f32.mrf.mxu2  ;;  %v1094_v10 = vpop.f32.mrf.mxu1 }
 0x109   : > { %v3750_v2 = vadd.f32 %v1508_v62, %v1090_v61  ;;  %v1095_v21 = vadd.f32 %v1094_v10, %v737_v7  ;;  %v3129_v61 = vld [vmem:[#allocation2 + $0xb8] sm:$0xff] }
 0x10a   : > { %2743 = vmatmul.msk.bf16.gmra.mxu0 %vm635_vm1, %v3091_v5 }
 0x10b   : > { %2887 = vmatmul.msk.bf16.gmra.mxu1 %vm635_vm1, %v3061_v8  ;;  %v1945_v15 = vrot.slane %v3750_v2, 1  ;;  %v1700_v19 = vrot.slane %v3750_v2, 7 }
 0x10c   : > { %3037 = vmatmul.msk.bf16.vlgmr.msra.gmra.mxu3 %vm635_vm1, %v3127_v6 }
 0x10e   : > { %1798 = vrot.lane.b32.xlu2 %v3750_v2, %s3364_s22 }
 0x10f   : > { %v3759_v17 = vpop.f32.mrf.mxu3  ;;  %v739_v23 = vpop.f32.mrf.mxu0 }
 0x110   : > { %v1510_v12 = vpop.f32.mrf.mxu2  ;;  %v1096_v25 = vpop.f32.mrf.mxu1 }
 0x111   : > { %v1620_v13 = vadd.f32 %v1510_v12, %v1092_v11  ;;  %v1097_v40 = vadd.f32 %v1096_v25, %v739_v23  ;;  %v3123_v11 = vld [vmem:[#allocation2 + $0x88] sm:$0xff]  ;;  %v3130_v25 = vld [vmem:[#allocation2 + $0xc0] sm:$0xff] }
 0x113   : > { %v1946_v16 = vrot.slane %v1620_v13, 1  ;;  %v1701_v20 = vrot.slane %v1620_v13, 7 }
 0x115   : > { %3031 = vmatmul.msk.bf16.gmra.mxu2 %vm635_vm1, %v3121_v14  ;;  %v1947_v22 = vsel %vm1934_vm2, %v1945_v15, %v1946_v16  ;;  %v3767_v24 = vsel %vm1693_vm3, %v1700_v19, %v1701_v20 }
 0x116   : > { %2023 = vrot.lane.b32.xlu0 %v1947_v22, %s3365_s27  ;;  %1800 = vrot.lane.b32.xlu2 %v1620_v13, %s3364_s22 }
 0x117   : > { %v3771_v31 = vpop.f32.mrf.mxu3  ;;  %v742_v35 = vpop.f32.mrf.mxu0 }
 0x118   : > { %v1513_v26 = vpop.f32.mrf.mxu2  ;;  %v1099_v37 = vpop.f32.mrf.mxu1 }
 0x119   : > { %v1621_v28 = vadd.f32 %v1513_v26, %v1095_v21  ;;  %v1100_v46 = vadd.f32 %v1099_v37, %v742_v35  ;;  %v3094_v26 = vld [vmem:[#allocation2 + $0x84] sm:$0xff] }
 0x11a   : > { %2744 = vmatmul.msk.bf16.gmra.mxu0 %vm635_vm1, %v3092_v32 }
 0x11b   : > { %v1948_v30 = vrot.slane %v1621_v28, 1  ;;  %2888 = vmatmul.msk.bf16.gmra.mxu1 %vm635_vm1, %v3062_v36  ;;  %v3124_v36 = vld [vmem:[#allocation2 + $0x90] sm:$0xff] }
 0x11c   : > { %3038 = vmatmul.msk.bf16.gmra.mxu3 %vm635_vm1, %v3128_v33 }
 0x11d   : > { %v1949_v34 = vsel %vm1934_vm2, %v1946_v16, %v1948_v30  ;;  %v3064_v30 = vld [vmem:[#allocation2 + $0x78] sm:$0xff] }
 0x11e   : > { %2025 = vrot.lane.b32.xlu1 %v1949_v34, %s3365_s27 }
 0x11f   : > { %v3782_v45 = vpop.f32.mrf.mxu3  ;;  %v744_v48 = vpop.f32.mrf.mxu0 }
 0x120   : > { %v1515_v41 = vpop.f32.mrf.mxu2  ;;  %v1101_v49 = vpop.f32.mrf.mxu1 }
 0x121   : > { %v3777_v42 = vadd.f32 %v1515_v41, %v1097_v40  ;;  %v1102_v7 = vadd.f32 %v1101_v49, %v744_v48 }
 0x123   : > { %1802 = vrot.lane.b32.xlu0 %v3777_v42, %s3364_s22  ;;  %v1950_v56 = vrot.slane %v3777_v42, 1  ;;  %v1703_v59 = vrot.slane %v3777_v42, 7 }
 0x125   : > { %3032 = vmatmul.msk.bf16.gmra.mxu2 %vm635_vm1, %v3122_v43 }
 0x127   : > { %v3787_v58 = vpop.f32.mrf.mxu3  ;;  %v747_v63 = vpop.f32.mrf.mxu0 }
 0x128   : > { %v1518_v50 = vpop.f32.mrf.mxu2  ;;  %v1104_v6 = vpop.f32.mrf.mxu1 }
 0x129   : > { %v1623_v51 = vadd.f32 %v1518_v50, %v1100_v46  ;;  %v1105_v14 = vadd.f32 %v1104_v6, %v747_v63  ;;  %v3095_v63 = vld [vmem:[#allocation2 + $0x8c] sm:$0xff]  ;;  %v1774_v6 = vsel %vm1693_vm3, 0.0, %v1694_v4  ;;  %v3125_v4 = vld [vmem:[#allocation2 + $0x98] sm:$0xff] }
 0x12a   : > { %2745 = vmatmul.msk.bf16.gmra.mxu0 %vm635_vm1, %v3093_v60 }
 0x12b   : > { %v1704_v53 = vrot.slane %v1623_v51, 7  ;;  %v1951_v54 = vrot.slane %v1623_v51, 1  ;;  %1804 = vrot.lane.b32.xlu1 %v1623_v51, %s3364_s22  ;;  %2889 = vmatmul.msk.bf16.gmra.mxu1 %vm635_vm1, %v3063_v0 }
 0x12c   : > { %3039 = vmatmul.msk.bf16.gmra.mxu3 %vm635_vm1, %v3129_v61 }
 0x12d   : > { %v1952_v62 = vsel %vm1934_vm2, %v1950_v56, %v1951_v54  ;;  %v3794_v5 = vsel %vm1693_vm3, %v1703_v59, %v1704_v53 }
 0x12e   : > { %2027 = vrot.lane.b32.xlu2 %v1952_v62, %s3365_s27  ;;  %v3131_v62 = vld [vmem:[#allocation2 + $0xc8] sm:$0xff] }
 0x12f   : > { %v3800_v13 = vpop.f32.mrf.mxu3  ;;  %v749_v16 = vpop.f32.mrf.mxu0 }
 0x130   : > { %v1520_v8 = vpop.f32.mrf.mxu2  ;;  %v1106_v20 = vpop.f32.mrf.mxu1 }
 0x131   : > { %v1624_v10 = vadd.f32 %v1520_v8, %v1102_v7  ;;  %v1107_v33 = vadd.f32 %v1106_v20, %v749_v16 }
 0x133   : > { %v1953_v12 = vrot.slane %v1624_v10, 1  ;;  %v3065_v10 = vld [vmem:[#allocation2 + $0x80] sm:$0xff] }
 0x135   : > { %3033 = vmatmul.msk.bf16.gmra.mxu2 %vm635_vm1, %v3123_v11  ;;  %v1954_v15 = vsel %vm1934_vm2, %v1951_v54, %v1953_v12  ;;  %v3836_v11 = vld [vmem:[%s4390_s2] ss:$0 sm:$0xff] }
 0x136   : > { %2029 = vrot.lane.b32.xlu0 %v1954_v15, %s3365_s27 }
 0x137   : > { %v3809_v23 = vpop.f32.mrf.mxu3  ;;  %v752_v28 = vpop.f32.mrf.mxu0 }
 0x138   : > { %v1523_v21 = vpop.f32.mrf.mxu2  ;;  %v1109_v32 = vpop.f32.mrf.mxu1 }
 0x139   : > { %v3805_v22 = vadd.f32 %v1523_v21, %v1105_v14  ;;  %v1110_v48 = vadd.f32 %v1109_v32, %v752_v28  ;;  %v3849_v28 = vstv %s2179_s21  ;;  %s3306_s21 = scalar_lea.hbm %s4392_s4, 512 }
 0x13a   : > { %2746 = vmatmul.msk.bf16.gmra.mxu0 %vm635_vm1, %v3094_v26  ;;  %p3308_p9 = scmp.lt.s32.totalorder %s3306_s21, %s3302_s24 }
 0x13b   : > { %1806 = vrot.lane.b32.xlu2 %v3805_v22, %s3364_s22  ;;  %2890 = vmatmul.msk.bf16.gmra.mxu1 %vm635_vm1, %v3064_v30  ;;  %v1955_v37 = vrot.slane %v3805_v22, 1  ;;  %v1706_v46 = vrot.slane %v3805_v22, 7 }
 0x13c   : > { %3040 = vmatmul.msk.bf16.gmra.mxu3 %vm635_vm1, %v3130_v25  ;;  %p3309_p2 = por %p3308_p9, %p3307_p11 }
 0x13e   : > { %p3310_p10 = pnand %p3309_p2, %p3305_p8 }
 0x13f   : > { %v3816_v43 = vpop.f32.mrf.mxu3  ;;  %v754_v50 = vpop.f32.mrf.mxu0 }
 0x140   : > { %v1525_v34 = vpop.f32.mrf.mxu2  ;;  %v1111_v53 = vpop.f32.mrf.mxu1 }
 0x141   : > { %v1626_v35 = vadd.f32 %v1525_v34, %v1107_v33  ;;  %v2016_v15 = vpop.permute.xlu2 %2015  ;;  %v1112_v16 = vadd.f32 %v1111_v53, %v754_v50 }
 0x143   : > { %v1707_v40 = vrot.slane %v1626_v35, 7  ;;  %v1956_v41 = vrot.slane %v1626_v35, 1  ;;  %1808 = vrot.lane.b32.xlu0 %v1626_v35, %s3364_s22 }
 0x145   : > { %3034 = vmatmul.msk.bf16.gmra.mxu2 %vm635_vm1, %v3124_v36  ;;  %v1957_v49 = vsel %vm1934_vm2, %v1955_v37, %v1956_v41  ;;  %v3824_v51 = vsel %vm1693_vm3, %v1706_v46, %v1707_v40 }
 0x146   : > { %2031 = vrot.lane.b32.xlu1 %v1957_v49, %s3365_s27 }
 0x147   : > { %v3827_v61 = vpop.f32.mrf.mxu3  ;;  %v757_v8 = vpop.f32.mrf.mxu0 }
 0x148   : > { %v1528_v54 = vpop.f32.mrf.mxu2  ;;  %v1114_v14 = vpop.f32.mrf.mxu1 }
 0x149   : > { %v1627_v56 = vadd.f32 %v1528_v54, %v1110_v48  ;;  %v1115_v30 = vadd.f32 %v1114_v14, %v757_v8  ;;  %v3132_v54 = vld [vmem:[#allocation2 + $0xd0] sm:$0xff] }
 0x14a   : > { %2747 = vmatmul.msk.bf16.gmra.mxu0 %vm635_vm1, %v3095_v63  ;;  %v3066_v63 = vld [vmem:[#allocation2 + $0x88] sm:$0xff] }
 0x14b   : > { %v1958_v60 = vrot.slane %v1627_v56, 1  ;;  %2891 = vmatmul.msk.bf16.gmra.mxu1 %vm635_vm1, %v3065_v10  ;;  %v3096_v56 = vld [vmem:[#allocation2 + $0x94] sm:$0xff] }
 0x14c   : > { %3041 = vmatmul.msk.bf16.gmra.mxu3 %vm635_vm1, %v3131_v62 }
 0x14d   : > { %v1791_v0 = vpop.permute.xlu0 %1790  ;;  %v1959_v7 = vsel %vm1934_vm2, %v1956_v41, %v1958_v60 }
 0x14e   : > { %v1886_v12 = vadd.f32 %v1791_v0, %v1774_v6  ;;  %2033 = vrot.lane.b32.xlu2 %v1959_v7, %s3365_s27 }
 0x14f   : > { %v3847_v26 = vpop.f32.mrf.mxu3  ;;  %v759_v32 = vpop.f32.mrf.mxu0 }
 0x150   : > { %v2111_v20 = vadd.f32 %v2016_v15, %v1886_v12  ;;  %v1530_v21 = vpop.f32.mrf.mxu2  ;;  %v1116_v33 = vpop.f32.mrf.mxu1 }
 0x151   : > { %v3841_v52 = vadd.f32 %v1530_v21, %v1112_v16  ;;  %v1117_v8 = vadd.f32 %v1116_v33, %v759_v32  ;;  %v3126_v16 = vld [vmem:[#allocation2 + $0xa0] sm:$0xff] }
 0x152   : > { %v2147_v25 = vadd.f32 %v3836_v11, %v2111_v20 }
 0x153   : > { %1810 = vrot.lane.b32.xlu1 %v3841_v52, %s3364_s22  ;;  %v1709_v41 = vrot.slane %v3841_v52, 7  ;;  %v1960_v48 = vrot.slane %v3841_v52, 1 }
 0x154   : > { %v2213_v34 = vmul.f32 %v3849_v28, %v2147_v25  ;;  %vm2180_vm4 = vcmp.gt.f32.partialorder %v2147_v25, 0.0 }
 0x155   : > { %3035 = vmatmul.msk.bf16.gmra.mxu2 %vm635_vm1, %v3125_v4  ;;  %v1793_v35 = vpop.permute.xlu0 %1792 }
 0x156   : > { %v2245_v40 = vsel %vm2180_vm4, %v2147_v25, %v2213_v34  ;;  %v1887_v7 = vadd.f32 %v1793_v35, %v3704_v9 }
 0x157   : > { %v3857_v53 = vpop.f32.mrf.mxu3  ;;  %v762_v62 = vpop.f32.mrf.mxu0 }
 0x158   : > { %v1533_v36 = vpop.f32.mrf.mxu2  ;;  %v1119_v6 = vpop.f32.mrf.mxu1  ;;  %v1177_v22 = vadd.f32 %v3857_v53, %v3727_v38 }
 0x159   : > { %v1629_v37 = vadd.f32 %v1533_v36, %v1115_v30  ;;  %v1120_v25 = vadd.f32 %v1119_v6, %v762_v62 }
 0x15a   : > { %2748 = vmatmul.msk.bf16.gmra.mxu0 %vm635_vm1, %v3096_v56 }
 0x15b   : > { %v1710_v49 = vrot.slane %v1629_v37, 7  ;;  %v1961_v50 = vrot.slane %v1629_v37, 1  ;;  %1812 = vrot.lane.b32.xlu2 %v1629_v37, %s3364_s22  ;;  %2341 = vrot.lane.b32.xlu1 %v2245_v40, %s3364_s22 }
 0x15c   : > { %3042 = vmatmul.msk.bf16.gmra.mxu3 %vm635_vm1, %v3132_v54  ;;  %2892 = vmatmul.msk.bf16.gmra.mxu1 %vm635_vm1, %v3066_v63 }
 0x15d   : > { %v1962_v60 = vsel %vm1934_vm2, %v1960_v48, %v1961_v50  ;;  %v3863_v0 = vsel %vm1693_vm3, %v1709_v41, %v1710_v49 }
 0x15e   : > { %2035 = vrot.lane.b32.xlu0 %v1962_v60, %s3365_s27 }
 0x15f   : > { %v3871_v4 = vpop.f32.mrf.mxu3  ;;  %v764_v33 = vpop.f32.mrf.mxu0 }
 0x160   : > { %v1535_v10 = vpop.f32.mrf.mxu2  ;;  %v2018_v12 = vpop.permute.xlu0 %2017 }
 0x161   : > { %v1630_v14 = vadd.f32 %v1535_v10, %v1117_v8  ;;  %v2112_v15 = vadd.f32 %v2018_v12, %v1887_v7  ;;  %v1121_v34 = vpop.f32.mrf.mxu1  ;;  %v2022_v56 = vpop.permute.xlu2 %2021  ;;  %v1775_v7 = vsel %vm1693_vm3, 0.0, %v1697_v39 }
 0x162   : > { %v1122_v60 = vadd.f32 %v1121_v34, %v764_v33 }
 0x163   : > { %v1963_v20 = vrot.slane %v1630_v14, 1  ;;  %v2148_v21 = vadd.f32 %v3836_v11, %v2112_v15 }
 0x165   : > { %3036 = vmatmul.msk.bf16.gmra.mxu2 %vm635_vm1, %v3126_v16  ;;  %v1795_v9 = vpop.permute.xlu1 %1794  ;;  %v1964_v30 = vsel %vm1934_vm2, %v1961_v50, %v1963_v20  ;;  %vm2181_vm5 = vcmp.gt.f32.partialorder %v2148_v21, 0.0  ;;  %v2214_v32 = vmul.f32 %v3849_v28, %v2148_v21 }
 0x166   : > { %2037 = vrot.lane.b32.xlu1 %v1964_v30, %s3365_s27  ;;  %v1888_v16 = vadd.f32 %v1795_v9, %v1775_v7 }
 0x167   : > { %v2246_v35 = vsel %vm2181_vm5, %v2148_v21, %v2214_v32  ;;  %v3882_v40 = vpop.f32.mrf.mxu3  ;;  %v767_v49 = vpop.f32.mrf.mxu0 }
 0x168   : > { %v1538_v36 = vpop.f32.mrf.mxu2  ;;  %2343 = vrot.lane.b32.xlu2 %v2246_v35, %s3364_s22 }
 0x169   : > { %v3878_v37 = vadd.f32 %v1538_v36, %v1120_v25  ;;  %v1124_v54 = vpop.f32.mrf.mxu1  ;;  %v1799_v7 = vpop.permute.xlu2 %1798 }
 0x16a   : > { %v1125_v33 = vadd.f32 %v1124_v54, %v767_v49 }
 0x16b   : > { %1814 = vrot.lane.b32.xlu0 %v3878_v37, %s3364_s22  ;;  %v1965_v10 = vrot.slane %v3878_v37, 1 }
 0x16d   : > { %v1797_v48 = vpop.permute.xlu1 %1796 }
 0x16e   : > { %v1889_v50 = vadd.f32 %v1797_v48, %v3734_v44  ;;  %v1712_v44 = vrot.slane %v3878_v37, 7  ;;  %v2280_v37 = vld [vmem:[%s3497_s29 + $0x18] sm:$0xff] }
 0x16f   : > { %v3891_v15 = vpop.f32.mrf.mxu3  ;;  %v769_v25 = vpop.f32.mrf.mxu0 }
 0x170   : > { %v2114_v62 = vadd.f32 %v2022_v56, %v1889_v50  ;;  %v1540_v63 = vpop.f32.mrf.mxu2 }
 0x171   : > { %v1632_v6 = vadd.f32 %v1540_v63, %v1122_v60  ;;  %v1126_v30 = vpop.f32.mrf.mxu1 }
 0x172   : > { %v2150_v8 = vadd.f32 %v3836_v11, %v2114_v62  ;;  %v1127_v63 = vadd.f32 %v1126_v30, %v769_v25 }
 0x173   : > { %v1713_v12 = vrot.slane %v1632_v6, 7  ;;  %v1966_v14 = vrot.slane %v1632_v6, 1  ;;  %1816 = vrot.lane.b32.xlu1 %v1632_v6, %s3364_s22 }
 0x174   : > { %v2216_v32 = vmul.f32 %v3849_v28, %v2150_v8  ;;  %vm2183_vm6 = vcmp.gt.f32.partialorder %v2150_v8, 0.0 }
 0x175   : > { %v2020_v20 = vpop.permute.xlu1 %2019  ;;  %v1967_v21 = vsel %vm1934_vm2, %v1965_v10, %v1966_v14  ;;  %v3898_v27 = vsel %vm1693_vm3, %v1712_v44, %v1713_v12 }
 0x176   : > { %v2113_v39 = vadd.f32 %v2020_v20, %v1888_v16  ;;  %2039 = vrot.lane.b32.xlu2 %v1967_v21, %s3365_s27  ;;  %v2248_v35 = vsel %vm2183_vm6, %v2150_v8, %v2216_v32  ;;  %v1776_v20 = vsel %vm1693_vm3, 0.0, %v1700_v19 }
 0x177   : > { %v3905_v48 = vpop.f32.mrf.mxu3  ;;  %v772_v60 = vpop.f32.mrf.mxu0  ;;  %v1890_v25 = vadd.f32 %v1799_v7, %v1776_v20 }
 0x178   : > { %v2149_v34 = vadd.f32 %v3836_v11, %v2113_v39  ;;  %v1543_v9 = vpop.f32.mrf.mxu2 }
 0x179   : > { %v1633_v50 = vadd.f32 %v1543_v9, %v1125_v33  ;;  %v1129_v62 = vpop.f32.mrf.mxu1 }
 0x17a   : > { %vm2182_vm7 = vcmp.gt.f32.partialorder %v2149_v34, 0.0  ;;  %v2215_v36 = vmul.f32 %v3849_v28, %v2149_v34  ;;  %v1130_v12 = vadd.f32 %v1129_v62, %v772_v60 }
 0x17b   : > { %2347 = vrot.lane.b32.xlu1 %v2248_v35, %s3364_s22  ;;  %v1968_v6 = vrot.slane %v1633_v50, 1 }
 0x17c   : > { %v2247_v56 = vsel %vm2182_vm7, %v2149_v34, %v2215_v36 }
 0x17d   : > { %2345 = vrot.lane.b32.xlu0 %v2247_v56, %s3364_s22  ;;  %v1969_v10 = vsel %vm1934_vm2, %v1966_v14, %v1968_v6  ;;  %v1801_v56 = vpop.permute.xlu2 %1800 }
 0x17e   : > { %v1891_v6 = vadd.f32 %v1801_v56, %v3767_v24  ;;  %v1165_v24 = vadd.f32 %v3800_v13, %v3680_v47  ;;  %v1167_v47 = vadd.f32 %v3809_v23, %v3688_v55 }
 0x17f   : > { %v3912_v8 = vpop.f32.mrf.mxu3  ;;  %v774_v16 = vpop.f32.mrf.mxu0 }
 0x180   : > { %v1545_v49 = vpop.f32.mrf.mxu2 }
 0x181   : > { %v3908_v54 = vadd.f32 %v1545_v49, %v1127_v63  ;;  %v1131_v21 = vpop.f32.mrf.mxu1 }
 0x182   : > { %v1132_v49 = vadd.f32 %v1131_v21, %v774_v16 }
 0x183   : > { %1818 = vrot.lane.b32.xlu2 %v3908_v54, %s3364_s22  ;;  %v1970_v34 = vrot.slane %v3908_v54, 1  ;;  %v1715_v50 = vrot.slane %v3908_v54, 7 }
 0x185   : > { %2041 = vrot.lane.b32.xlu0 %v1969_v10, %s3365_s27 }
 0x187   : > { %v3921_v36 = vpop.f32.mrf.mxu3  ;;  %v777_v60 = vpop.f32.mrf.mxu0 }
 0x188   : > { %v1548_v39 = vpop.f32.mrf.mxu2  ;;  %v2024_v30 = vpop.permute.xlu0 %2023 }
 0x189   : > { %v1635_v32 = vadd.f32 %v1548_v39, %v1130_v12  ;;  %v2115_v33 = vadd.f32 %v2024_v30, %v1890_v25  ;;  %v1134_v63 = vpop.f32.mrf.mxu1 }
 0x18b   : > { %v1716_v9 = vrot.slane %v1635_v32, 7  ;;  %v1971_v35 = vrot.slane %v1635_v32, 1  ;;  %v2151_v14 = vadd.f32 %v3836_v11, %v2115_v33  ;;  %v1135_v33 = vadd.f32 %v1134_v63, %v777_v60 }
 0x18d   : > { %1820 = vrot.lane.b32.xlu0 %v1635_v32, %s3364_s22  ;;  %v1972_v2 = vsel %vm1934_vm2, %v1970_v34, %v1971_v35  ;;  %vm2184_vm8 = vcmp.gt.f32.partialorder %v2151_v14, 0.0  ;;  %v2217_v19 = vmul.f32 %v3849_v28, %v2151_v14  ;;  %v3930_v62 = vsel %vm1693_vm3, %v1715_v50, %v1716_v9 }
 0x18e   : > { %2043 = vrot.lane.b32.xlu1 %v1972_v2, %s3365_s27 }
 0x18f   : > { %v2249_v7 = vsel %vm2184_vm8, %v2151_v14, %v2217_v19  ;;  %v1583_v32 = vpop.f32.mrf.mxu3  ;;  %v779_v9 = vpop.f32.mrf.mxu0  ;;  %v1777_v19 = vsel %vm1693_vm3, 0.0, %v1703_v59 }
 0x190   : > { %v1550_v10 = vpop.f32.mrf.mxu2  ;;  %v2026_v12 = vpop.permute.xlu1 %2025  ;;  %2349 = vrot.lane.b32.xlu2 %v2249_v7, %s3364_s22  ;;  %v3947_v63 = vadd.f32 %v1583_v32, %v1165_v24 }
 0x191   : > { %v1636_v20 = vadd.f32 %v1550_v10, %v1132_v49  ;;  %v2116_v25 = vadd.f32 %v2026_v12, %v1891_v6  ;;  %v1136_v2 = vpop.f32.mrf.mxu1  ;;  %v2028_v49 = vpop.permute.xlu2 %2027 }
 0x192   : > { %v1995_v7 = vrot.slane %v3947_v63, 1 }
 0x193   : > { %v1973_v39 = vrot.slane %v1636_v20, 1  ;;  %v2152_v30 = vadd.f32 %v3836_v11, %v2116_v25  ;;  %v1730_v25 = vrot.slane %v3947_v63, 7 }
 0x195   : > { %vm2185_vm9 = vcmp.gt.f32.partialorder %v2152_v30, 0.0  ;;  %v2218_v34 = vmul.f32 %v3849_v28, %v2152_v30  ;;  %v1803_v16 = vpop.permute.xlu0 %1802  ;;  %v1974_v14 = vsel %vm1934_vm2, %v1971_v35, %v1973_v39  ;;  %v1137_v39 = vadd.f32 %v1136_v2, %v779_v9 }
 0x196   : > { %v1892_v13 = vadd.f32 %v1803_v16, %v1777_v19 }
 0x197   : > { %v2250_v21 = vsel %vm2185_vm9, %v2152_v30, %v2218_v34  ;;  %v1585_v35 = vpop.f32.mrf.mxu3  ;;  %v782_v59 = vpop.f32.mrf.mxu0 }
 0x198   : > { %v1553_v56 = vpop.f32.mrf.mxu2  ;;  %2351 = vrot.lane.b32.xlu0 %v2250_v21, %s3364_s22  ;;  %2045 = vrot.lane.b32.xlu2 %v1974_v14, %s3365_s27  ;;  %v1650_v6 = vadd.f32 %v1585_v35, %v1167_v47  ;;  %v2117_v10 = vadd.f32 %v2028_v49, %v1892_v13 }
 0x199   : > { %v3945_v60 = vadd.f32 %v1553_v56, %v1135_v33  ;;  %v1139_v20 = vpop.f32.mrf.mxu1  ;;  %v1170_v33 = vadd.f32 %v3816_v43, %v3696_v3 }
 0x19a   : > { %v1731_v42 = vrot.slane %v1650_v6, 7  ;;  %v1996_v12 = vrot.slane %v1650_v6, 1  ;;  %v2153_v34 = vadd.f32 %v3836_v11, %v2117_v10  ;;  %v1140_v3 = vadd.f32 %v1139_v20, %v782_v59 }
 0x19b   : > { %1822 = vrot.lane.b32.xlu1 %v3945_v60, %s3364_s22  ;;  %v1718_v24 = vrot.slane %v3945_v60, 7  ;;  %v1975_v56 = vrot.slane %v3945_v60, 1 }
 0x19c   : > { %v1997_v55 = vsel %vm1934_vm2, %v1995_v7, %v1996_v12  ;;  %v3961_v23 = vsel %vm1693_vm3, %v1730_v25, %v1731_v42  ;;  %v2219_v35 = vmul.f32 %v3849_v28, %v2153_v34  ;;  %vm2186_vm10 = vcmp.gt.f32.partialorder %v2153_v34, 0.0 }
 0x19d   : > { %v1805_v21 = vpop.permute.xlu1 %1804 }
 0x19e   : > { %v2251_v59 = vsel %vm2186_vm10, %v2153_v34, %v2219_v35 }
 0x19f   : > { %v1588_v16 = vpop.f32.mrf.mxu3  ;;  %v784_v47 = vpop.f32.mrf.mxu0 }
 0x1a0   : > { %v1555_v30 = vpop.f32.mrf.mxu2  ;;  %1838 = vrot.lane.b32.xlu0 %v3947_v63, %s3364_s22  ;;  %v1651_v14 = vadd.f32 %v1588_v16, %v1170_v33 }
 0x1a1   : > { %v1638_v32 = vadd.f32 %v1555_v30, %v1137_v39  ;;  %v1141_v13 = vpop.f32.mrf.mxu1  ;;  %v1807_v30 = vpop.permute.xlu2 %1806 }
 0x1a2   : > { %v1998_v43 = vrot.slane %v1651_v14, 1  ;;  %v1172_v14 = vadd.f32 %v3827_v61, %v3709_v18 }
 0x1a3   : > { %v1719_v9 = vrot.slane %v1638_v32, 7  ;;  %v1976_v2 = vrot.slane %v1638_v32, 1  ;;  %1840 = vrot.lane.b32.xlu1 %v1650_v6, %s3364_s22  ;;  %1824 = vrot.lane.b32.xlu2 %v1638_v32, %s3364_s22  ;;  %v1893_v6 = vadd.f32 %v1805_v21, %v3794_v5 }
 0x1a4   : > { %v1999_v42 = vsel %vm1934_vm2, %v1996_v12, %v1998_v43 }
 0x1a5   : > { %v3973_v19 = vsel %vm1693_vm3, %v1718_v24, %v1719_v9  ;;  %v1977_v49 = vsel %vm1934_vm2, %v1975_v56, %v1976_v2  ;;  %v1175_v56 = vadd.f32 %v3847_v26, %v3722_v29 }
 0x1a7   : > { %v1590_v5 = vpop.f32.mrf.mxu3  ;;  %v787_v9 = vpop.f32.mrf.mxu0 }
 0x1a8   : > { %v1558_v7 = vpop.f32.mrf.mxu2  ;;  %v2030_v10 = vpop.permute.xlu0 %2029  ;;  %2047 = vrot.lane.b32.xlu0 %v1977_v49, %s3365_s27  ;;  %v3987_v34 = vadd.f32 %v1590_v5, %v1172_v14 }
 0x1a9   : > { %v2118_v39 = vadd.f32 %v2030_v10, %v1893_v6  ;;  %v1639_v32 = vadd.f32 %v1558_v7, %v1140_v3  ;;  %v1144_v16 = vpop.f32.mrf.mxu1  ;;  %v2034_v3 = vpop.permute.xlu2 %2033  ;;  %v1142_v6 = vadd.f32 %v1141_v13, %v784_v47 }
 0x1aa   : > { %v2000_v61 = vrot.slane %v3987_v34, 1  ;;  %v1145_v49 = vadd.f32 %v1144_v16, %v787_v9  ;;  %v1733_v26 = vrot.slane %v3987_v34, 7 }
 0x1ab   : > { %v2154_v20 = vadd.f32 %v3836_v11, %v2118_v39  ;;  %2353 = vrot.lane.b32.xlu1 %v2251_v59, %s3364_s22  ;;  %2063 = vrot.lane.b32.xlu2 %v1997_v55, %s3365_s27  ;;  %v1978_v33 = vrot.slane %v1639_v32, 1  ;;  %v1778_v32 = vsel %vm1693_vm3, 0.0, %v1706_v46 }
 0x1ac   : > { %v1894_v5 = vadd.f32 %v1807_v30, %v1778_v32 }
 0x1ad   : > { %v2220_v21 = vmul.f32 %v3849_v28, %v2154_v20  ;;  %vm2187_vm11 = vcmp.gt.f32.partialorder %v2154_v20, 0.0  ;;  %v1979_v55 = vsel %vm1934_vm2, %v1976_v2, %v1978_v33 }
 0x1af   : > { %v2252_v43 = vsel %vm2187_vm11, %v2154_v20, %v2220_v21  ;;  %v1593_v35 = vpop.f32.mrf.mxu3  ;;  %v789_v39 = vpop.f32.mrf.mxu0 }
 0x1b0   : > { %v1560_v12 = vpop.f32.mrf.mxu2  ;;  %2065 = vrot.lane.b32.xlu0 %v1999_v42, %s3365_s27  ;;  %v1653_v18 = vadd.f32 %v1593_v35, %v1175_v56 }
 0x1b1   : > { %v3995_v7 = vadd.f32 %v1560_v12, %v1142_v6  ;;  %v1146_v29 = vpop.f32.mrf.mxu1 }
 0x1b2   : > { %v1734_v10 = vrot.slane %v1653_v18, 7  ;;  %v2001_v42 = vrot.slane %v1653_v18, 1 }
 0x1b3   : > { %2049 = vrot.lane.b32.xlu1 %v1979_v55, %s3365_s27  ;;  %2355 = vrot.lane.b32.xlu2 %v2252_v43, %s3364_s22  ;;  %v1721_v14 = vrot.slane %v3995_v7, 7  ;;  %v1980_v6 = vrot.slane %v3995_v7, 1 }
 0x1b4   : > { %v2002_v47 = vsel %vm1934_vm2, %v2000_v61, %v2001_v42  ;;  %v4007_v13 = vsel %vm1693_vm3, %v1733_v26, %v1734_v10 }
 0x1b5   : > { %v1809_v2 = vpop.permute.xlu0 %1808  ;;  %v4014_v9 = vpop.permute.xlu2 %1812 }
 0x1b6   : > { %v1895_v46 = vadd.f32 %v1809_v2, %v3824_v51 }
 0x1b7   : > { %v1595_v30 = vpop.f32.mrf.mxu3  ;;  %v792_v55 = vpop.f32.mrf.mxu0 }
 0x1b8   : > { %v1563_v59 = vpop.f32.mrf.mxu2  ;;  %v2032_v20 = vpop.permute.xlu1 %2031  ;;  %1826 = vrot.lane.b32.xlu0 %v3995_v7, %s3364_s22  ;;  %v1654_v12 = vadd.f32 %v1595_v30, %v1177_v22  ;;  %v2120_v51 = vadd.f32 %v2034_v3, %v1895_v46 }
 0x1b9   : > { %v4009_v33 = vadd.f32 %v1563_v59, %v1145_v49  ;;  %v2119_v21 = vadd.f32 %v2032_v20, %v1894_v5  ;;  %v1149_v43 = vpop.f32.mrf.mxu1  ;;  %v2278_v49 = vld [vmem:[%s3497_s29 + $0x8] sm:$0xff] }
 0x1ba   : > { %v2003_v56 = vrot.slane %v1654_v12, 1  ;;  %v2156_v2 = vadd.f32 %v3836_v11, %v2120_v51 }
 0x1bb   : > { %v1722_v16 = vrot.slane %v4009_v33, 7  ;;  %1828 = vrot.lane.b32.xlu1 %v4009_v33, %s3364_s22  ;;  %1842 = vrot.lane.b32.xlu2 %v3987_v34, %s3364_s22  ;;  %v1981_v53 = vrot.slane %v4009_v33, 1  ;;  %v2155_v35 = vadd.f32 %v3836_v11, %v2119_v21 }
 0x1bc   : > { %v2004_v10 = vsel %vm1934_vm2, %v2001_v42, %v2003_v56  ;;  %v2222_v46 = vmul.f32 %v3849_v28, %v2156_v2  ;;  %vm2189_vm13 = vcmp.gt.f32.partialorder %v2156_v2, 0.0  ;;  %v1150_v56 = vadd.f32 %v1149_v43, %v792_v55 }
 0x1bd   : > { %v4025_v38 = vsel %vm1693_vm3, %v1721_v14, %v1722_v16  ;;  %v1982_v3 = vsel %vm1934_vm2, %v1980_v6, %v1981_v53  ;;  %v2221_v5 = vmul.f32 %v3849_v28, %v2155_v35  ;;  %vm2188_vm12 = vcmp.gt.f32.partialorder %v2155_v35, 0.0 }
 0x1bf   : > { %v1598_v20 = vpop.f32.mrf.mxu3  ;;  %v794_v33 = vpop.f32.mrf.mxu0  ;;  %v2253_v21 = vsel %vm2188_vm12, %v2155_v35, %v2221_v5 }
 0x1c0   : > { %v1565_v61 = vpop.f32.mrf.mxu2  ;;  %1844 = vrot.lane.b32.xlu0 %v1653_v18, %s3364_s22  ;;  %v1147_v18 = vadd.f32 %v1146_v29, %v789_v39  ;;  %v1182_v39 = vadd.f32 %v3882_v40, %v3748_v1  ;;  %v2254_v29 = vsel %vm2189_vm13, %v2156_v2, %v2222_v46  ;;  %v1185_v46 = vadd.f32 %v3891_v15, %v3759_v17 }
 0x1c1   : > { %v1151_v22 = vpop.f32.mrf.mxu1 }
 0x1c2   : > { %v2344_v32 = vpop.permute.xlu2 %2343  ;;  %v1642_v16 = vadd.f32 %v1565_v61, %v1147_v18  ;;  %v1152_v43 = vadd.f32 %v1151_v22, %v794_v33  ;;  %v1779_v33 = vsel %vm1693_vm3, 0.0, %v1709_v41 }
 0x1c3   : > { %v2438_v59 = vsel %vm635_vm1, %v2278_v49, %v2344_v32  ;;  %2067 = vrot.lane.b32.xlu1 %v2002_v47, %s3365_s27  ;;  %2051 = vrot.lane.b32.xlu2 %v1982_v3, %s3365_s27  ;;  %v1180_v47 = vadd.f32 %v3871_v4, %v3742_v57  ;;  %v2277_v57 = vld [vmem:[%s3497_s29] sm:$0xff] }
 0x1c4   : > { %2470 = vst [vmem:[%s4041_s28 + $0x8] sm:$0xff] %v2438_v59  ;;  %v1983_v51 = vrot.slane %v1642_v16, 1 }
 0x1c5   : > { %v1811_v42 = vpop.permute.xlu1 %1810  ;;  %v4048_v12 = vadd.f32 %v1598_v20, %v1180_v47 }
 0x1c7   : > { %v1600_v4 = vpop.f32.mrf.mxu3  ;;  %v1736_v6 = vrot.slane %v4048_v12, 7  ;;  %v2005_v49 = vrot.slane %v4048_v12, 1  ;;  %v797_v40 = vpop.f32.mrf.mxu0 }
 0x1c8   : > { %v1568_v30 = vpop.f32.mrf.mxu2  ;;  %2357 = vrot.lane.b32.xlu0 %v2253_v21, %s3364_s22  ;;  %v1656_v35 = vadd.f32 %v1600_v4, %v1182_v39  ;;  %v1896_v21 = vadd.f32 %v1811_v42, %v1779_v33  ;;  %v1897_v4 = vadd.f32 %v4014_v9, %v3863_v0  ;;  %v1187_v0 = vadd.f32 %v3905_v48, %v3771_v31 }
 0x1c9   : > { %v1154_v2 = vpop.f32.mrf.mxu1  ;;  %v4058_v55 = vadd.f32 %v1568_v30, %v1150_v56  ;;  %v1190_v33 = vadd.f32 %v3912_v8, %v3782_v45 }
 0x1ca   : > { %v1737_v3 = vrot.slane %v1656_v35, 7  ;;  %v2006_v1 = vrot.slane %v1656_v35, 1 }
 0x1cb   : > { %2359 = vrot.lane.b32.xlu1 %v2254_v29, %s3364_s22  ;;  %2069 = vrot.lane.b32.xlu2 %v2004_v10, %s3365_s27  ;;  %v1984_v10 = vsel %vm1934_vm2, %v1981_v53, %v1983_v51  ;;  %v1724_v16 = vrot.slane %v4058_v55, 7  ;;  %v1985_v51 = vrot.slane %v4058_v55, 1 }
 0x1cc   : > { %v2007_v20 = vsel %vm1934_vm2, %v2005_v49, %v2006_v1  ;;  %v4067_v5 = vsel %vm1693_vm3, %v1736_v6, %v1737_v3 }
 0x1cd   : > { %v2342_v61 = vpop.permute.xlu1 %2341 }
 0x1ce   : > { %v2437_v32 = vsel %vm635_vm1, %v2277_v57, %v2342_v61 }
 0x1cf   : > { %2469 = vst [vmem:[%s4041_s28] sm:$0xff] %v2437_v32  ;;  %v1603_v47 = vpop.f32.mrf.mxu3  ;;  %v799_v39 = vpop.f32.mrf.mxu0 }
 0x1d0   : > { %v1570_v59 = vpop.f32.mrf.mxu2  ;;  %2053 = vrot.lane.b32.xlu0 %v1984_v10, %s3365_s27  ;;  %v2036_v22 = vpop.permute.xlu0 %2035  ;;  %v1657_v30 = vadd.f32 %v1603_v47, %v1185_v46  ;;  %v1155_v10 = vadd.f32 %v1154_v2, %v797_v40 }
 0x1d1   : > { %v4069_v18 = vadd.f32 %v1570_v59, %v1152_v43  ;;  %v2121_v41 = vadd.f32 %v2036_v22, %v1896_v21  ;;  %v1156_v29 = vpop.f32.mrf.mxu1  ;;  %v2040_v61 = vpop.permute.xlu2 %2039 }
 0x1d2   : > { %v2008_v15 = vrot.slane %v1657_v30, 1  ;;  %v1157_v22 = vadd.f32 %v1156_v29, %v799_v39 }
 0x1d3   : > { %v1725_v53 = vrot.slane %v4069_v18, 7  ;;  %1846 = vrot.lane.b32.xlu1 %v4048_v12, %s3364_s22  ;;  %1830 = vrot.lane.b32.xlu2 %v4058_v55, %s3364_s22  ;;  %v1986_v52 = vrot.slane %v4069_v18, 1  ;;  %v2157_v49 = vadd.f32 %v3836_v11, %v2121_v41 }
 0x1d4   : > { %v2009_v42 = vsel %vm1934_vm2, %v2006_v1, %v2008_v15 }
 0x1d5   : > { %v4085_v17 = vsel %vm1693_vm3, %v1724_v16, %v1725_v53  ;;  %v1987_v32 = vsel %vm1934_vm2, %v1985_v51, %v1986_v52  ;;  %v2223_v59 = vmul.f32 %v3849_v28, %v2157_v49  ;;  %vm2190_vm14 = vcmp.gt.f32.partialorder %v2157_v49, 0.0 }
 0x1d7   : > { %v1605_v43 = vpop.f32.mrf.mxu3  ;;  %v2255_v40 = vsel %vm2190_vm14, %v2157_v49, %v2223_v59  ;;  %v802_v2 = vpop.f32.mrf.mxu0  ;;  %v1780_v49 = vsel %vm1693_vm3, 0.0, %v1712_v44 }
 0x1d8   : > { %v1573_v56 = vpop.f32.mrf.mxu2  ;;  %1832 = vrot.lane.b32.xlu0 %v4069_v18, %s3364_s22  ;;  %v2038_v57 = vpop.permute.xlu1 %2037 }
 0x1d9   : > { %v2122_v3 = vadd.f32 %v2038_v57, %v1897_v4  ;;  %v1645_v1 = vadd.f32 %v1573_v56, %v1155_v10  ;;  %v1159_v53 = vpop.f32.mrf.mxu1  ;;  %v2281_v57 = vld [vmem:[%s3497_s29 + $0x20] sm:$0xff] }
 0x1da   : > { %v1160_v30 = vadd.f32 %v1159_v53, %v802_v2 }
 0x1db   : > { %2055 = vrot.lane.b32.xlu1 %v1987_v32, %s3365_s27  ;;  %1848 = vrot.lane.b32.xlu2 %v1656_v35, %s3364_s22  ;;  %v2158_v18 = vadd.f32 %v3836_v11, %v2122_v3  ;;  %v4107_v35 = vadd.f32 %v1605_v43, %v1187_v0  ;;  %v1988_v47 = vrot.slane %v1645_v1, 1  ;;  %v1192_v3 = vadd.f32 %v3921_v36, %v3787_v58  ;;  %v2279_v1 = vld [vmem:[%s3497_s29 + $0x10] sm:$0xff] }
 0x1dd   : > { %v4103_v46 = vpop.permute.xlu2 %1818  ;;  %v2224_v48 = vmul.f32 %v3849_v28, %v2158_v18  ;;  %vm2191_vm15 = vcmp.gt.f32.partialorder %v2158_v18, 0.0  ;;  %v2010_v45 = vrot.slane %v4107_v35, 1  ;;  %v1739_v15 = vrot.slane %v4107_v35, 7  ;;  %v1815_v39 = vpop.permute.xlu0 %1814 }
 0x1de   : > { %v1898_v43 = vadd.f32 %v1815_v39, %v1780_v49  ;;  %v1989_v59 = vsel %vm1934_vm2, %v1986_v52, %v1988_v47 }
 0x1df   : > { %v1608_v31 = vpop.f32.mrf.mxu3  ;;  %v2256_v51 = vsel %vm2191_vm15, %v2158_v18, %v2224_v48 }
 0x1e0   : > { %v1575_v9 = vpop.f32.mrf.mxu2  ;;  %2071 = vrot.lane.b32.xlu0 %v2007_v20, %s3365_s27  ;;  %v1659_v20 = vadd.f32 %v1608_v31, %v1190_v33  ;;  %v2123_v33 = vadd.f32 %v2040_v61, %v1898_v43 }
 0x1e1   : > { %v4114_v29 = vadd.f32 %v1575_v9, %v1157_v22 }
 0x1e2   : > { %v1740_v8 = vrot.slane %v1659_v20, 7  ;;  %v2011_v41 = vrot.slane %v1659_v20, 1  ;;  %v2159_v48 = vadd.f32 %v3836_v11, %v2123_v33 }
 0x1e3   : > { %2073 = vrot.lane.b32.xlu1 %v2009_v42, %s3365_s27  ;;  %2361 = vrot.lane.b32.xlu2 %v2255_v40, %s3364_s22  ;;  %v1727_v18 = vrot.slane %v4114_v29, 7  ;;  %v1990_v61 = vrot.slane %v4114_v29, 1 }
 0x1e4   : > { %v2012_v42 = vsel %vm1934_vm2, %v2010_v45, %v2011_v41  ;;  %v4122_v4 = vsel %vm1693_vm3, %v1739_v15, %v1740_v8  ;;  %v1161_v45 = vpop.f32.mrf.mxu1  ;;  %vm2192_vm0 = vcmp.gt.f32.partialorder %v2159_v48, 0.0 }
 0x1e5   : > { %v1817_v21 = vpop.permute.xlu1 %1816 }
 0x1e6   : > { %v1899_v39 = vadd.f32 %v1817_v21, %v3898_v27  ;;  %v1781_v21 = vsel %vm1693_vm3, 0.0, %v1715_v50 }
 0x1e7   : > { %v1610_v44 = vpop.f32.mrf.mxu3 }
 0x1e8   : > { %v1578_v56 = vpop.f32.mrf.mxu2  ;;  %2363 = vrot.lane.b32.xlu0 %v2256_v51, %s3364_s22  ;;  %v1660_v58 = vadd.f32 %v1610_v44, %v1192_v3 }
 0x1e9   : > { %v4127_v32 = vadd.f32 %v1578_v56, %v1160_v30  ;;  %v804_v30 = vpop.f32.mrf.mxu0 }
 0x1ea   : > { %v2350_v10 = vpop.permute.xlu2 %2349  ;;  %v2013_v2 = vrot.slane %v1660_v58, 1  ;;  %v1162_v51 = vadd.f32 %v1161_v45, %v804_v30 }
 0x1eb   : > { %v1728_v0 = vrot.slane %v4127_v32, 7  ;;  %v2441_v9 = vsel %vm635_vm1, %v2281_v57, %v2350_v10  ;;  %1834 = vrot.lane.b32.xlu1 %v4114_v29, %s3364_s22  ;;  %2057 = vrot.lane.b32.xlu2 %v1989_v59, %s3365_s27  ;;  %v1991_v47 = vrot.slane %v4127_v32, 1 }
 0x1ec   : > { %2473 = vst [vmem:[%s4041_s28 + $0x20] sm:$0xff] %v2441_v9  ;;  %v2014_v31 = vsel %vm1934_vm2, %v2011_v41, %v2013_v2  ;;  %v2225_v41 = vmul.f32 %v3849_v28, %v2159_v48  ;;  %v2282_v2 = vld [vmem:[%s3497_s29 + $0x28] sm:$0xff] }
 0x1ed   : > { %v2348_v36 = vpop.permute.xlu1 %2347  ;;  %v4144_v52 = vsel %vm1693_vm3, %v1727_v18, %v1728_v0  ;;  %v1992_v49 = vsel %vm1934_vm2, %v1990_v61, %v1991_v47  ;;  %v1900_v0 = vadd.f32 %v4103_v46, %v1781_v21  ;;  %v1786_v61 = vsel %vm1693_vm3, 0.0, %v1730_v25  ;;  %v2283_v25 = vld [vmem:[%s3497_s29 + $0x30] sm:$0xff] }
 0x1ee   : > { %v2440_v40 = vsel %vm635_vm1, %v2280_v37, %v2348_v36 }
 0x1ef   : > { %2472 = vst [vmem:[%s4041_s28 + $0x18] sm:$0xff] %v2440_v40  ;;  %v2346_v53 = vpop.permute.xlu0 %2345 }
 0x1f0   : > { %v2439_v22 = vsel %vm635_vm1, %v2279_v1, %v2346_v53  ;;  %1850 = vrot.lane.b32.xlu0 %v4107_v35, %s3364_s22  ;;  %v1580_v56 = vpop.f32.mrf.mxu2 }
 0x1f1   : > { %2471 = vst [vmem:[%s4041_s28 + $0x10] sm:$0xff] %v2439_v22 }
 0x1f2   : > { %v2046_v8 = vpop.permute.xlu2 %2045 }
 0x1f3   : > { %1852 = vrot.lane.b32.xlu1 %v1659_v20, %s3364_s22  ;;  %1836 = vrot.lane.b32.xlu2 %v4127_v32, %s3364_s22  ;;  %v1648_v20 = vadd.f32 %v1580_v56, %v1162_v51  ;;  %v2257_v32 = vsel %vm2192_vm0, %v2159_v48, %v2225_v41  ;;  %v2284_v48 = vld [vmem:[%s3497_s29 + $0x38] sm:$0xff] }
 0x1f5   : > { %v1993_v10 = vrot.slane %v1648_v20, 1 }
 0x1f7   : > { %v2042_v57 = vpop.permute.xlu0 %2041  ;;  %v1994_v54 = vsel %vm1934_vm2, %v1991_v47, %v1993_v10 }
 0x1f8   : > { %v2124_v3 = vadd.f32 %v2042_v57, %v1899_v39  ;;  %2059 = vrot.lane.b32.xlu0 %v1992_v49, %s3365_s27  ;;  %v1782_v49 = vsel %vm1693_vm3, 0.0, %v1718_v24 }
 0x1fa   : > { %v2160_v43 = vadd.f32 %v3836_v11, %v2124_v3 }
 0x1fb   : > { %2075 = vrot.lane.b32.xlu2 %v2012_v42, %s3365_s27  ;;  %2365 = vrot.lane.b32.xlu1 %v2257_v32, %s3364_s22 }
 0x1fc   : > { %v2226_v59 = vmul.f32 %v3849_v28, %v2160_v43  ;;  %vm2193_vm4 = vcmp.gt.f32.partialorder %v2160_v43, 0.0 }
 0x1fd   : > { %v4166_v27 = vpop.permute.xlu2 %1824 }
 0x1fe   : > { %v2258_v36 = vsel %vm2193_vm4, %v2160_v43, %v2226_v59 }
 0x1ff   : > { %v1821_v9 = vpop.permute.xlu0 %1820 }
 0x200   : > { %v1901_v37 = vadd.f32 %v1821_v9, %v3930_v62  ;;  %2077 = vrot.lane.b32.xlu0 %v2014_v31, %s3365_s27  ;;  %v2044_v42 = vpop.permute.xlu1 %2043 }
 0x201   : > { %v2125_v44 = vadd.f32 %v2044_v42, %v1900_v0 }
 0x202   : > { %v2126_v58 = vadd.f32 %v2046_v8, %v1901_v37 }
 0x203   : > { %v2161_v50 = vadd.f32 %v3836_v11, %v2125_v44  ;;  %2367 = vrot.lane.b32.xlu2 %v2258_v36, %s3364_s22  ;;  %2061 = vrot.lane.b32.xlu1 %v1994_v54, %s3365_s27  ;;  %v1903_v44 = vadd.f32 %v4166_v27, %v3973_v19 }
 0x204   : > { %v2162_v46 = vadd.f32 %v3836_v11, %v2126_v58 }
 0x205   : > { %v2064_v62 = vpop.permute.xlu2 %2063  ;;  %vm2194_vm5 = vcmp.gt.f32.partialorder %v2161_v50, 0.0  ;;  %v2227_v1 = vmul.f32 %v3849_v28, %v2161_v50 }
 0x206   : > { %v2228_v33 = vmul.f32 %v3849_v28, %v2162_v46  ;;  %vm2195_vm6 = vcmp.gt.f32.partialorder %v2162_v46, 0.0 }
 0x207   : > { %v2259_v40 = vsel %vm2194_vm5, %v2161_v50, %v2227_v1 }
 0x208   : > { %2369 = vrot.lane.b32.xlu0 %v2259_v40, %s3364_s22  ;;  %v2260_v22 = vsel %vm2195_vm6, %v2162_v46, %v2228_v33 }
 0x20a   : > { %v2352_v53 = vpop.permute.xlu0 %2351 }
 0x20b   : > { %v2442_v31 = vsel %vm635_vm1, %v2282_v2, %v2352_v53  ;;  %2371 = vrot.lane.b32.xlu1 %v2260_v22, %s3364_s22 }
 0x20c   : > { %2474 = vst [vmem:[%s4041_s28 + $0x28] sm:$0xff] %v2442_v31 }
 0x20d   : > { %v1823_v47 = vpop.permute.xlu1 %1822  ;;  %v2356_v30 = vpop.permute.xlu2 %2355 }
 0x20e   : > { %v2444_v45 = vsel %vm635_vm1, %v2284_v48, %v2356_v30  ;;  %v1902_v3 = vadd.f32 %v1823_v47, %v1782_v49  ;;  %v1787_v48 = vsel %vm1693_vm3, 0.0, %v1733_v26 }
 0x20f   : > { %2476 = vst [vmem:[%s4041_s28 + $0x38] sm:$0xff] %v2444_v45 }
 0x212   : > { %v1839_v8 = vpop.permute.xlu0 %1838 }
 0x213   : > { %v1910_v39 = vadd.f32 %v1839_v8, %v1786_v61 }
 0x215   : > { %v2135_v51 = vadd.f32 %v2064_v62, %v1910_v39  ;;  %v1841_v41 = vpop.permute.xlu1 %1840  ;;  %v1843_v56 = vpop.permute.xlu2 %1842 }
 0x216   : > { %v1911_v24 = vadd.f32 %v1841_v41, %v3961_v23  ;;  %v1783_v23 = vsel %vm1693_vm3, 0.0, %v1721_v14  ;;  %v1912_v45 = vadd.f32 %v1843_v56, %v1787_v48 }
 0x217   : > { %v2171_v57 = vadd.f32 %v3836_v11, %v2135_v51 }
 0x219   : > { %vm2204_vm2 = vcmp.gt.f32.partialorder %v2171_v57, 0.0  ;;  %v2237_v20 = vmul.f32 %v3849_v28, %v2171_v57 }
 0x21a   : > { %v2048_v43 = vpop.permute.xlu0 %2047 }
 0x21b   : > { %v2127_v63 = vadd.f32 %v2048_v43, %v1902_v3  ;;  %v2269_v32 = vsel %vm2204_vm2, %v2171_v57, %v2237_v20  ;;  %v2285_v57 = vld [vmem:[%s3497_s29 + $0x40] sm:$0xff]  ;;  %v2286_v43 = vld [vmem:[%s3497_s29 + $0x48] sm:$0xff] }
 0x21c   : > { %2389 = vrot.lane.b32.xlu1 %v2269_v32, %s3364_s22 }
 0x21d   : > { %v2163_v21 = vadd.f32 %v3836_v11, %v2127_v63  ;;  %v2354_v10 = vpop.permute.xlu1 %2353  ;;  %v2052_v59 = vpop.permute.xlu2 %2051 }
 0x21e   : > { %v2443_v0 = vsel %vm635_vm1, %v2283_v25, %v2354_v10 }
 0x21f   : > { %2475 = vst [vmem:[%s4041_s28 + $0x30] sm:$0xff] %v2443_v0  ;;  %vm2196_vm7 = vcmp.gt.f32.partialorder %v2163_v21, 0.0  ;;  %v2229_v60 = vmul.f32 %v3849_v28, %v2163_v21 }
 0x221   : > { %v2261_v9 = vsel %vm2196_vm7, %v2163_v21, %v2229_v60 }
 0x222   : > { %v2066_v37 = vpop.permute.xlu0 %2065  ;;  %2373 = vrot.lane.b32.xlu2 %v2261_v9, %s3364_s22 }
 0x223   : > { %v2136_v42 = vadd.f32 %v2066_v37, %v1911_v24 }
 0x225   : > { %v2172_v58 = vadd.f32 %v3836_v11, %v2136_v42  ;;  %v2050_v36 = vpop.permute.xlu1 %2049  ;;  %v2070_v54 = vpop.permute.xlu2 %2069 }
 0x226   : > { %v2128_v50 = vadd.f32 %v2050_v36, %v1903_v44  ;;  %v1784_v36 = vsel %vm1693_vm3, 0.0, %v1724_v16 }
 0x227   : > { %vm2205_vm8 = vcmp.gt.f32.partialorder %v2172_v58, 0.0  ;;  %v2238_v46 = vmul.f32 %v3849_v28, %v2172_v58 }
 0x228   : > { %v2164_v62 = vadd.f32 %v3836_v11, %v2128_v50  ;;  %v4220_v11 = vld [vmem:[%s4390_s2] ss:$0 sm:$0xff] }
 0x229   : > { %v2270_v1 = vsel %vm2205_vm8, %v2172_v58, %v2238_v46 }
 0x22a   : > { %v1827_v33 = vpop.permute.xlu0 %1826  ;;  %2391 = vrot.lane.b32.xlu2 %v2270_v1, %s3364_s22  ;;  %vm2197_vm9 = vcmp.gt.f32.partialorder %v2164_v62, 0.0  ;;  %v2230_v19 = vmul.f32 %v3849_v28, %v2164_v62 }
 0x22b   : > { %v1904_v27 = vadd.f32 %v1827_v33, %v1783_v23  ;;  %v1788_v33 = vsel %vm1693_vm3, 0.0, %v1736_v6 }
 0x22c   : > { %v2262_v40 = vsel %vm2197_vm9, %v2164_v62, %v2230_v19 }
 0x22d   : > { %v2129_v2 = vadd.f32 %v2052_v59, %v1904_v27  ;;  %v1829_v53 = vpop.permute.xlu1 %1828  ;;  %2375 = vrot.lane.b32.xlu0 %v2262_v40, %s3364_s22  ;;  %v1831_v22 = vpop.permute.xlu2 %1830 }
 0x22e   : > { %v1905_v59 = vadd.f32 %v1829_v53, %v4025_v38  ;;  %v1906_v38 = vadd.f32 %v1831_v22, %v1784_v36 }
 0x22f   : > { %v2165_v7 = vadd.f32 %v4220_v11, %v2129_v2 }
 0x231   : > { %vm2198_vm10 = vcmp.gt.f32.partialorder %v2165_v7, 0.0  ;;  %v2231_v14 = vmul.f32 %v3849_v28, %v2165_v7 }
 0x232   : > { %v1845_v31 = vpop.permute.xlu0 %1844 }
 0x233   : > { %v1913_v47 = vadd.f32 %v1845_v31, %v4007_v13  ;;  %v2263_v30 = vsel %vm2198_vm10, %v2165_v7, %v2231_v14  ;;  %v2288_v14 = vld [vmem:[%s3497_s29 + $0x58] sm:$0xff] }
 0x234   : > { %2377 = vrot.lane.b32.xlu1 %v2263_v30, %s3364_s22  ;;  %v2290_v30 = vld [vmem:[%s3497_s29 + $0x68] sm:$0xff] }
 0x235   : > { %v2138_v61 = vadd.f32 %v2070_v54, %v1913_v47  ;;  %v2068_v8 = vpop.permute.xlu1 %2067  ;;  %v1849_v39 = vpop.permute.xlu2 %1848 }
 0x236   : > { %v2137_v51 = vadd.f32 %v2068_v8, %v1912_v45  ;;  %v4230_v41 = vadd.f32 %v1849_v39, %v4067_v5  ;;  %v2287_v5 = vld [vmem:[%s3497_s29 + $0x50] sm:$0xff]  ;;  %v1789_v39 = vsel %vm1693_vm3, 0.0, %v1739_v15 }
 0x237   : > { %v2174_v34 = vadd.f32 %v4220_v11, %v2138_v61 }
 0x238   : > { %v2173_v26 = vadd.f32 %v4220_v11, %v2137_v51 }
 0x239   : > { %vm2207_vm11 = vcmp.gt.f32.partialorder %v2174_v34, 0.0  ;;  %v2240_v13 = vmul.f32 %v3849_v28, %v2174_v34 }
 0x23a   : > { %v2358_v56 = vpop.permute.xlu0 %2357  ;;  %vm2206_vm12 = vcmp.gt.f32.partialorder %v2173_v26, 0.0  ;;  %v2239_v49 = vmul.f32 %v3849_v28, %v2173_v26 }
 0x23b   : > { %v2445_v3 = vsel %vm635_vm1, %v2285_v57, %v2358_v56  ;;  %v2272_v20 = vsel %vm2207_vm11, %v2174_v34, %v2240_v13  ;;  %v1785_v56 = vsel %vm1693_vm3, 0.0, %v1727_v18 }
 0x23c   : > { %2477 = vst [vmem:[%s4041_s28 + $0x40] sm:$0xff] %v2445_v3  ;;  %2395 = vrot.lane.b32.xlu1 %v2272_v20, %s3364_s22  ;;  %v2271_v63 = vsel %vm2206_vm12, %v2173_v26, %v2239_v49 }
 0x23d   : > { %v2360_v32 = vpop.permute.xlu1 %2359  ;;  %2393 = vrot.lane.b32.xlu0 %v2271_v63, %s3364_s22  ;;  %v2362_v25 = vpop.permute.xlu2 %2361 }
 0x23e   : > { %v2446_v21 = vsel %vm635_vm1, %v2286_v43, %v2360_v32  ;;  %v2447_v10 = vsel %vm635_vm1, %v2287_v5, %v2362_v25  ;;  %v2289_v5 = vld [vmem:[%s3497_s29 + $0x60] sm:$0xff] }
 0x23f   : > { %2478 = vst [vmem:[%s4041_s28 + $0x48] sm:$0xff] %v2446_v21 }
 0x240   : > { %2479 = vst [vmem:[%s4041_s28 + $0x50] sm:$0xff] %v2447_v10 }
 0x242   : > { %v2054_v0 = vpop.permute.xlu0 %2053 }
 0x243   : > { %v2130_v60 = vadd.f32 %v2054_v0, %v1905_v59 }
 0x245   : > { %v2166_v24 = vadd.f32 %v4220_v11, %v2130_v60  ;;  %v1847_v9 = vpop.permute.xlu1 %1846  ;;  %v2058_v37 = vpop.permute.xlu2 %2057 }
 0x246   : > { %v1914_v27 = vadd.f32 %v1847_v9, %v1788_v33 }
 0x247   : > { %vm2199_vm13 = vcmp.gt.f32.partialorder %v2166_v24, 0.0  ;;  %v2232_v42 = vmul.f32 %v3849_v28, %v2166_v24 }
 0x249   : > { %v2264_v44 = vsel %vm2199_vm13, %v2166_v24, %v2232_v42  ;;  %v2291_v42 = vld [vmem:[%s3497_s29 + $0x70] sm:$0xff] }
 0x24a   : > { %v1833_v58 = vpop.permute.xlu0 %1832  ;;  %2379 = vrot.lane.b32.xlu2 %v2264_v44, %s3364_s22 }
 0x24b   : > { %v1907_v54 = vadd.f32 %v1833_v58, %v4085_v17  ;;  %v2293_v58 = vld [vmem:[%s3497_s29 + $0x80] sm:$0xff] }
 0x24d   : > { %v2132_v50 = vadd.f32 %v2058_v37, %v1907_v54  ;;  %v2056_v46 = vpop.permute.xlu1 %2055  ;;  %v1837_v62 = vpop.permute.xlu2 %1836 }
 0x24e   : > { %v2131_v1 = vadd.f32 %v2056_v46, %v1906_v38  ;;  %v1909_v59 = vadd.f32 %v1837_v62, %v4144_v52  ;;  %v2292_v38 = vld [vmem:[%s3497_s29 + $0x78] sm:$0xff] }
 0x24f   : > { %v2168_v23 = vadd.f32 %v4220_v11, %v2132_v50 }
 0x250   : > { %v2167_v19 = vadd.f32 %v4220_v11, %v2131_v1 }
 0x251   : > { %vm2201_vm14 = vcmp.gt.f32.partialorder %v2168_v23, 0.0  ;;  %v2234_v55 = vmul.f32 %v3849_v28, %v2168_v23 }
 0x252   : > { %v2072_v16 = vpop.permute.xlu0 %2071  ;;  %vm2200_vm15 = vcmp.gt.f32.partialorder %v2167_v19, 0.0  ;;  %v2233_v17 = vmul.f32 %v3849_v28, %v2167_v19 }
 0x253   : > { %v2139_v40 = vadd.f32 %v2072_v16, %v1914_v27  ;;  %v2266_v2 = vsel %vm2201_vm14, %v2168_v23, %v2234_v55  ;;  %v2301_v16 = vld [vmem:[%s3497_s29 + $0xc0] sm:$0xff] }
 0x254   : > { %2383 = vrot.lane.b32.xlu1 %v2266_v2, %s3364_s22  ;;  %v2265_v12 = vsel %vm2200_vm15, %v2167_v19, %v2233_v17 }
 0x255   : > { %v2175_v6 = vadd.f32 %v4220_v11, %v2139_v40  ;;  %v2074_v53 = vpop.permute.xlu1 %2073  ;;  %2381 = vrot.lane.b32.xlu0 %v2265_v12, %s3364_s22  ;;  %v2076_v22 = vpop.permute.xlu2 %2075 }
 0x256   : > { %v2140_v37 = vadd.f32 %v2074_v53, %v4230_v41 }
 0x257   : > { %vm2208_vm0 = vcmp.gt.f32.partialorder %v2175_v6, 0.0  ;;  %v2241_v7 = vmul.f32 %v3849_v28, %v2175_v6 }
 0x258   : > { %v2176_v50 = vadd.f32 %v4220_v11, %v2140_v37 }
 0x259   : > { %v2273_v31 = vsel %vm2208_vm0, %v2175_v6, %v2241_v7  ;;  %v2296_v6 = vld [vmem:[%s3497_s29 + $0x98] sm:$0xff] }
 0x25a   : > { %v2364_v48 = vpop.permute.xlu0 %2363  ;;  %2397 = vrot.lane.b32.xlu2 %v2273_v31, %s3364_s22  ;;  %v2242_v33 = vmul.f32 %v3849_v28, %v2176_v50  ;;  %vm2209_vm2 = vcmp.gt.f32.partialorder %v2176_v50, 0.0 }
 0x25b   : > { %v2448_v47 = vsel %vm635_vm1, %v2288_v14, %v2364_v48  ;;  %v2304_v48 = vld [vmem:[%s3497_s29 + $0xd8] sm:$0xff] }
 0x25c   : > { %2480 = vst [vmem:[%s4041_s28 + $0x58] sm:$0xff] %v2448_v47  ;;  %v2274_v27 = vsel %vm2209_vm2, %v2176_v50, %v2242_v33  ;;  %v2303_v47 = vld [vmem:[%s3497_s29 + $0xd0] sm:$0xff] }
 0x25d   : > { %v1835_v45 = vpop.permute.xlu1 %1834  ;;  %v2368_v61 = vpop.permute.xlu2 %2367 }
 0x25e   : > { %v2450_v8 = vsel %vm635_vm1, %v2290_v30, %v2368_v61  ;;  %v1908_v49 = vadd.f32 %v1835_v45, %v1785_v56 }
 0x25f   : > { %2482 = vst [vmem:[%s4041_s28 + $0x68] sm:$0xff] %v2450_v8 }
 0x262   : > { %v1851_v51 = vpop.permute.xlu0 %1850 }
 0x263   : > { %v1916_v34 = vadd.f32 %v1851_v51, %v1789_v39  ;;  %v2305_v39 = vld [vmem:[%s3497_s29 + $0xe0] sm:$0xff] }
 0x265   : > { %v2141_v26 = vadd.f32 %v2076_v22, %v1916_v34  ;;  %v1853_v57 = vpop.permute.xlu1 %1852  ;;  %v2295_v22 = vld [vmem:[%s3497_s29 + $0x90] sm:$0xff] }
 0x266   : > { %v1917_v18 = vadd.f32 %v1853_v57, %v4122_v4  ;;  %v2297_v57 = vld [vmem:[%s3497_s29 + $0xa0] sm:$0xff] }
 0x267   : > { %v2177_v13 = vadd.f32 %v4220_v11, %v2141_v26  ;;  %v2298_v26 = vld [vmem:[%s3497_s29 + $0xa8] sm:$0xff] }
 0x269   : > { %vm2210_vm4 = vcmp.gt.f32.partialorder %v2177_v13, 0.0  ;;  %v2243_v3 = vmul.f32 %v3849_v28, %v2177_v13 }
 0x26a   : > { %v2060_v20 = vpop.permute.xlu0 %2059 }
 0x26b   : > { %v2133_v43 = vadd.f32 %v2060_v20, %v1908_v49  ;;  %v2275_v35 = vsel %vm2210_vm4, %v2177_v13, %v2243_v3  ;;  %v2299_v20 = vld [vmem:[%s3497_s29 + $0xb0] sm:$0xff] }
 0x26c   : > { %2401 = vrot.lane.b32.xlu1 %v2275_v35, %s3364_s22 }
 0x26d   : > { %v2169_v15 = vadd.f32 %v4220_v11, %v2133_v43  ;;  %v2366_v63 = vpop.permute.xlu1 %2365 }
 0x26e   : > { %v2449_v32 = vsel %vm635_vm1, %v2289_v5, %v2366_v63  ;;  %v2308_v5 = vld [vmem:[%s3497_s29 + $0xf8] sm:$0xff] }
 0x26f   : > { %2481 = vst [vmem:[%s4041_s28 + $0x60] sm:$0xff] %v2449_v32  ;;  %vm2202_vm5 = vcmp.gt.f32.partialorder %v2169_v15, 0.0  ;;  %v2235_v29 = vmul.f32 %v3849_v28, %v2169_v15  ;;  %v2307_v32 = vld [vmem:[%s3497_s29 + $0xf0] sm:$0xff] }
 0x271   : > { %v2267_v25 = vsel %vm2202_vm5, %v2169_v15, %v2235_v29 }
 0x272   : > { %v2078_v21 = vpop.permute.xlu0 %2077  ;;  %2385 = vrot.lane.b32.xlu2 %v2267_v25, %s3364_s22  ;;  %v2300_v25 = vld [vmem:[%s3497_s29 + $0xb8] sm:$0xff] }
 0x273   : > { %v2142_v10 = vadd.f32 %v2078_v21, %v1917_v18 }
 0x275   : > { %v2178_v0 = vadd.f32 %v4220_v11, %v2142_v10  ;;  %v2062_v60 = vpop.permute.xlu1 %2061 }
 0x276   : > { %v2134_v24 = vadd.f32 %v2062_v60, %v1909_v59  ;;  %v2306_v59 = vld [vmem:[%s3497_s29 + $0xe8] sm:$0xff] }
 0x277   : > { %vm2211_vm3 = vcmp.gt.f32.partialorder %v2178_v0, 0.0  ;;  %v2244_v9 = vmul.f32 %v3849_v28, %v2178_v0 }
 0x278   : > { %v2170_v4 = vadd.f32 %v4220_v11, %v2134_v24  ;;  %v2302_v11 = vld [vmem:[%s3497_s29 + $0xc8] sm:$0xff] }
 0x279   : > { %v2276_v44 = vsel %vm2211_vm3, %v2178_v0, %v2244_v9 }
 0x27a   : > { %2403 = vrot.lane.b32.xlu2 %v2276_v44, %s3364_s22  ;;  %v2370_v52 = vpop.permute.xlu0 %2369  ;;  %vm2203_vm6 = vcmp.gt.f32.partialorder %v2170_v4, 0.0  ;;  %v2236_v36 = vmul.f32 %v3849_v28, %v2170_v4  ;;  %v2294_v28 = vld [vmem:[%s3497_s29 + $0x88] sm:$0xff] }
 0x27b   : > { %v2451_v54 = vsel %vm635_vm1, %v2291_v42, %v2370_v52 }
 0x27c   : > { %2483 = vst [vmem:[%s4041_s28 + $0x70] sm:$0xff] %v2451_v54  ;;  %v2374_v41 = vpop.permute.xlu2 %2373  ;;  %v2268_v46 = vsel %vm2203_vm6, %v2170_v4, %v2236_v36 }
 0x27d   : > { %v2453_v62 = vsel %vm635_vm1, %v2293_v58, %v2374_v41  ;;  %v2372_v1 = vpop.permute.xlu1 %2371  ;;  %2387 = vrot.lane.b32.xlu0 %v2268_v46, %s3364_s22 }
 0x27e   : > { %2485 = vst [vmem:[%s4041_s28 + $0x80] sm:$0xff] %v2453_v62  ;;  %v2452_v23 = vsel %vm635_vm1, %v2292_v38, %v2372_v1 }
 0x27f   : > { %2484 = vst [vmem:[%s4041_s28 + $0x78] sm:$0xff] %v2452_v23 }
 0x284   : > { %v2392_v19 = vpop.permute.xlu2 %2391 }
 0x285   : > { %v2462_v55 = vsel %vm635_vm1, %v2302_v11, %v2392_v19  ;;  %2399 = vrot.lane.b32.xlu0 %v2274_v27, %s3364_s22 }
 0x286   : > { %2494 = vst [vmem:[%s4041_s28 + $0xc8] sm:$0xff] %v2462_v55 }
 0x28e   : > { %v2390_v17 = vpop.permute.xlu1 %2389 }
 0x28f   : > { %v2461_v40 = vsel %vm635_vm1, %v2301_v16, %v2390_v17 }
 0x290   : > { %2493 = vst [vmem:[%s4041_s28 + $0xc0] sm:$0xff] %v2461_v40 }
 0x29f   : > { %v2376_v2 = vpop.permute.xlu0 %2375 }
 0x2a0   : > { %v2454_v12 = vsel %vm635_vm1, %v2294_v28, %v2376_v2 }
 0x2a1   : > { %2486 = vst [vmem:[%s4041_s28 + $0x88] sm:$0xff] %v2454_v12 }
 0x2a4   : > { %v2380_v53 = vpop.permute.xlu2 %2379 }
 0x2a5   : > { %v2456_v7 = vsel %vm635_vm1, %v2296_v6, %v2380_v53 }
 0x2a6   : > { %2488 = vst [vmem:[%s4041_s28 + $0x98] sm:$0xff] %v2456_v7  ;;  %v2378_v14 = vpop.permute.xlu1 %2377 }
 0x2a7   : > { %v2455_v31 = vsel %vm635_vm1, %v2295_v22, %v2378_v14 }
 0x2a8   : > { %2487 = vst [vmem:[%s4041_s28 + $0x90] sm:$0xff] %v2455_v31 }
 0x2ae   : > { %v2396_v30 = vpop.permute.xlu1 %2395 }
 0x2af   : > { %v2464_v45 = vsel %vm635_vm1, %v2304_v48, %v2396_v30  ;;  %v2394_v61 = vpop.permute.xlu0 %2393 }
 0x2b0   : > { %2496 = vst [vmem:[%s4041_s28 + $0xd8] sm:$0xff] %v2464_v45  ;;  %v2463_v8 = vsel %vm635_vm1, %v2303_v47, %v2394_v61 }
 0x2b1   : > { %2495 = vst [vmem:[%s4041_s28 + $0xd0] sm:$0xff] %v2463_v8 }
 0x2b4   : > { %v2398_v51 = vpop.permute.xlu2 %2397 }
 0x2b5   : > { %v2465_v34 = vsel %vm635_vm1, %v2305_v39, %v2398_v51 }
 0x2b6   : > { %2497 = vst [vmem:[%s4041_s28 + $0xe0] sm:$0xff] %v2465_v34 }
 0x2c6   : > { %v2384_v13 = vpop.permute.xlu1 %2383 }
 0x2c7   : > { %v2458_v56 = vsel %vm635_vm1, %v2298_v26, %v2384_v13  ;;  %v2382_v49 = vpop.permute.xlu0 %2381 }
 0x2c8   : > { %2490 = vst [vmem:[%s4041_s28 + $0xa8] sm:$0xff] %v2458_v56  ;;  %v2457_v3 = vsel %vm635_vm1, %v2297_v57, %v2382_v49 }
 0x2c9   : > { %2489 = vst [vmem:[%s4041_s28 + $0xa0] sm:$0xff] %v2457_v3 }
 0x2cc   : > { %v2386_v43 = vpop.permute.xlu2 %2385 }
 0x2cd   : > { %v2459_v35 = vsel %vm635_vm1, %v2299_v20, %v2386_v43 }
 0x2ce   : > { %2491 = vst [vmem:[%s4041_s28 + $0xb0] sm:$0xff] %v2459_v35 }
 0x2d4   : > { %v2404_v15 = vpop.permute.xlu2 %2403 }
 0x2d5   : > { %v2468_v63 = vsel %vm635_vm1, %v2308_v5, %v2404_v15 }
 0x2d6   : > { %2500 = vst [vmem:[%s4041_s28 + $0xf8] sm:$0xff] %v2468_v63 }
 0x2de   : > { %v2402_v29 = vpop.permute.xlu1 %2401 }
 0x2df   : > { %v2467_v18 = vsel %vm635_vm1, %v2307_v32, %v2402_v29 }
 0x2e0   : > { %2499 = vst [vmem:[%s4041_s28 + $0xf0] sm:$0xff] %v2467_v18 }
 0x2ef   : > { %v2388_v21 = vpop.permute.xlu0 %2387 }
 0x2f0   : > { %v2460_v10 = vsel %vm635_vm1, %v2300_v25, %v2388_v21 }
 0x2f1   : > { %2492 = vst [vmem:[%s4041_s28 + $0xb8] sm:$0xff] %v2460_v10 }
 0x2f7   : > { %v2400_v0 = vpop.permute.xlu0 %2399 }
 0x2f8   : > { %v2466_v60 = vsel %vm635_vm1, %v2306_v59, %v2400_v0 }
 0x2f9   : > { %2498 = vst [vmem:[%s4041_s28 + $0xe8] sm:$0xff] %v2466_v60 }
 0x2fa   : > { %3313 = shalt.err (!%p3310_p10)
}
 0x2fb   : > { %s3366_s15 = smov 128   ;;  %s3367_s26 = smov 8  }
 0x2fc   : > { %3164 = dma.vmem_to_hbm [thread:$0]  (%p3463_p7), %s2515_s11, 4096, %s2517_s14, %s2502_s16, %s3366_s15, %s3366_s15, %s3367_s26  }
 0x2fd PF: > { %s2531_s28 = sand.u32 1, %s3344_s17   ;;  %p4398_p12 = scmp.ge.s32.totalorder %s3356_s20, 2 }
 0x2fe   : > { %s2532_s5 = scalar_lea.sflag [#allocation6], %s2531_s28 }
 0x2ff   : > { %p3175_p13 = pnand %p4398_p12, %p3431_p6 }
 0x301   : > { %p3176_p0 = pneg %p3175_p13 }
 0x303   : > { %3339 = dma.done.wait (%p3176_p0), %s2532_s5, 4096  }
 0x304   : > { %3341 = vsyncadd (%p3176_p0), %s2532_s5, 4294963200  ;;  %p19_p3 = scmp.ge.s32.totalorder %s3449_s30, 4   ;;  %s4399_s17 = smov %s3348_s18 }
 0x305   : > { %s4400_s18 = smov %s3352_s19  ;;  %s4401_s19 = smov %s3459_s9 }
 0x306   : > { %s4402_s20 = smov %s3449_s30  ;;  %21 = sbr.rel (!%p19_p3) target bundleno = 8 (0x8), region = 90 }
 0x30b   :  { %2538 = vsyncpa [#allocation5], 1 }
 0x30c   :  { %2540 = vsyncpa [#allocation5 + $0x1], 1 }
 0x30d   :  { %2541 = vsyncpa [#allocation8], 1 }
 0x30e   :  { %2542 = vsyncpa [#allocation6], 1 }
 0x30f   :  { %2544 = vsyncpa [#allocation6 + $0x1], 1 }

</bundles_post_ra>
